<compile_context>
chip_gen: v7x
topology: tpu7x:2x2x1
jax: 0.10.0
libtpu: 0.0.40
codegen_flags: <defaults>
</compile_context>

<pallas_src>
import functools

import jax
import jax.numpy as jnp
import numpy as np
from jax import lax
from jax.experimental import pallas as pl
from jax.experimental.pallas import tpu as pltpu


def _round_up(x, m):
    return (x + m - 1) // m * m


def temporal_block_kernel(*refs, K, dil, residual_mode):
    """Grid = (batch, L-tile). Fully fused: conv1+ReLU, conv2+ReLU, residual
    (identity / separate 1x1 conv / folded into conv1), final ReLU."""
    if residual_mode == "separate":
        (x_ref, w1_ref, b1_ref, w2_ref, b2_ref, wd_ref, bd_ref,
         o_ref, xwin_ref, hwin_ref) = refs
    else:
        x_ref, w1_ref, b1_ref, w2_ref, b2_ref, o_ref, xwin_ref, hwin_ref = refs
        wd_ref = bd_ref = None

    j = pl.program_id(1)
    TL = o_ref.shape[1]                  # rows per L tile (multiple of 16)
    Cout_p = o_ref.shape[2]
    H = xwin_ref.shape[0] - TL           # causal history rows (>= (K-1)*dilation)

    # First L tile of every sequence: history rows are the causal zero padding.
    @pl.when(j == 0)
    def _():
        xwin_ref[:H, :] = jnp.zeros((H, xwin_ref.shape[1]), xwin_ref.dtype)
        hwin_ref[:H, :] = jnp.zeros((H, hwin_ref.shape[1]), hwin_ref.dtype)

    def causal_conv(win_ref, w_ref, bias_row):
        # K accumulating matmuls straight off the window scratch (no im2col slab).
        Cb = win_ref.shape[1]
        acc = jnp.broadcast_to(bias_row, (TL, w_ref.shape[1])).astype(jnp.float32)
        for k in range(K):
            off = H - (K - 1 - k) * dil          # static slice start
            acc = acc + jnp.dot(win_ref[off:off + TL, :],
                                w_ref[k * Cb:(k + 1) * Cb, :],
                                preferred_element_type=jnp.float32)
        return acc

    x_tile = x_ref[0]                            # (TL, Cin_p) bf16
    xwin_ref[H:, :] = x_tile

    # --- conv1 (causal, dilated) + bias (+ fused downsample cols) + ReLU ------
    a1 = causal_conv(xwin_ref, w1_ref, b1_ref[0])
    if residual_mode == "fused":
        h1 = jnp.maximum(a1[:, :Cout_p], 0.0)
        res = a1[:, Cout_p:]                     # 1x1 downsample rode along on the MXU
    else:
        h1 = jnp.maximum(a1, 0.0)
        if residual_mode == "separate":
            res = jnp.dot(x_tile, wd_ref[...],
                          preferred_element_type=jnp.float32) + bd_ref[0]
        else:                                    # identity residual
            res = x_tile.astype(jnp.float32)

    # --- conv2 (causal, dilated) + bias + ReLU; dropout1/2 = identity (eval) --
    hwin_ref[H:, :] = h1.astype(jnp.bfloat16)
    h2 = jnp.maximum(causal_conv(hwin_ref, w2_ref, b2_ref[0]), 0.0)

    # --- residual add + final ReLU; bf16 writeback --------------------------
    o_ref[0] = jnp.maximum(h2 + res, 0.0).astype(o_ref.dtype)

    # Carry the last H rows of x / h1 into the next L tile of this sequence.
    @pl.when(j + 1 < pl.num_programs(1))
    def _():
        xwin_ref[:H, :] = xwin_ref[TL:, :]
        hwin_ref[:H, :] = hwin_ref[TL:, :]


def temporal_block(x, params, *, kernel_size, dilation, l_tile=512,
                   channels_last=False, out_dtype=jnp.bfloat16):
    """x: (N, Cin, L) PyTorch NCL layout, or (N, L, Cin) if channels_last=True.
    Returns (N, Cout, L) (or (N, L, Cout)) in out_dtype."""
    if channels_last:
        N, L, Cin = x.shape
        x_nlc = x
    else:
        N, Cin, L = x.shape
        x_nlc = jnp.transpose(x, (0, 2, 1))

    K, dil = kernel_size, dilation
    P = dil * (K - 1)                 # padding == (K-1)*dilation, stride == 1 (TCN block)

    w1, b1 = params["w1"], params["b1"]
    w2, b2 = params["w2"], params["b2"]
    wd, bd = params["wd"], params["bd"]
    Cout = w1.shape[2]
    has_downsample = wd is not None
    if not has_downsample:
        assert Cin == Cout, "identity residual requires n_inputs == n_outputs"

    # MXU / lane-friendly padded sizes.
    Cin_p = _round_up(Cin, 128)
    Cout_p = _round_up(Cout, 128)
    # v6e/v7x MXUs are 256 wide: when Cout_p == 128, fold the 1x1 downsample into
    # 128 extra output columns of conv1 (placed on the last tap = current time).
    if has_downsample and Cout_p == 128:
        residual_mode = "fused"
    elif has_downsample:
        residual_mode = "separate"
    else:
        residual_mode = "identity"

    # bf16-sublane-aligned history length; shrink the L tile for very wide
    # channels so per-step VMEM stays inside v7x's smaller budget.
    H = max(16, _round_up(P, 16))
    l_tile_eff = l_tile if max(Cin_p, Cout_p) < 512 else min(l_tile, 256)
    TL = min(_round_up(l_tile_eff, 16), _round_up(L, 16))
    Lp = _round_up(L, TL)
    nL = Lp // TL

    # Channels-last, zero-padded, bf16 for MXU inputs (accumulation stays f32).
    x_p = jnp.pad(x_nlc, ((0, 0), (0, Lp - L), (0, Cin_p - Cin))).astype(jnp.bfloat16)

    def pad_w3(w, ci_p, co_p):        # (K, ci, co) -> (K, ci_p, co_p)
        return jnp.pad(w, ((0, 0), (0, ci_p - w.shape[1]), (0, co_p - w.shape[2])))

    def pad_b(b):
        return jnp.pad(b.astype(jnp.float32), ((0, 0), (0, Cout_p - b.shape[1])))

    w1_3 = pad_w3(w1, Cin_p, Cout_p)
    if residual_mode == "fused":
        wd_full = jnp.pad(wd, ((0, Cin_p - Cin), (0, Cout_p - Cout)))
        wd_3 = jnp.zeros((K, Cin_p, Cout_p), w1_3.dtype).at[K - 1].set(wd_full)
        w1_f = jnp.concatenate([w1_3, wd_3], axis=2).reshape(K * Cin_p, 2 * Cout_p)
        b1_f = jnp.concatenate([pad_b(b1), pad_b(bd)], axis=1)
    else:
        w1_f = w1_3.reshape(K * Cin_p, Cout_p)
        b1_f = pad_b(b1)
    w1_f = w1_f.astype(jnp.bfloat16)
    W1 = w1_f.shape[1]

    w2_f = pad_w3(w2, Cout_p, Cout_p).reshape(K * Cout_p, Cout_p).astype(jnp.bfloat16)
    b2_f = pad_b(b2)

    inputs = [x_p, w1_f, b1_f, w2_f, b2_f]
    if residual_mode == "separate":
        wd_p = jnp.pad(wd, ((0, Cin_p - Cin), (0, Cout_p - Cout))).astype(jnp.bfloat16)
        bd_p = pad_b(bd)
        inputs += [wd_p, bd_p]

    kernel = functools.partial(temporal_block_kernel, K=K, dil=dil,
                               residual_mode=residual_mode)

    flops = 2 * N * Lp * (K * Cin_p * W1 + K * Cout_p * Cout_p)
    if residual_mode == "separate":
        flops += 2 * N * Lp * Cin_p * Cout_p
    bytes_accessed = (sum(int(a.size) * a.dtype.itemsize for a in inputs)
                      + N * Lp * Cout_p * 2)                    # bf16 output stream
    cost = pl.CostEstimate(flops=int(flops), transcendentals=0,
                           bytes_accessed=int(bytes_accessed))

    try:
        vmem_cap = int(pltpu.get_tpu_info().vmem_capacity_bytes)
    except Exception:
        vmem_cap = 64 * 1024 * 1024   # v7x-safe fallback

    def make_call(single_buffer_weights):
        def const_spec(shape):
            # Weights/biases never change across the grid; single-buffer them.
            if single_buffer_weights:
                return pl.BlockSpec(shape, lambda n, j: (0,) * len(shape),
                                    pipeline_mode=pl.Buffered(1))
            return pl.BlockSpec(shape, lambda n, j: (0,) * len(shape))

        in_specs = [pl.BlockSpec((1, TL, Cin_p), lambda n, j: (n, j, 0)),  # x tile
                    const_spec((K * Cin_p, W1)),                           # w1 (resident)
                    const_spec((1, W1)),                                   # b1 (+bd if fused)
                    const_spec((K * Cout_p, Cout_p)),                      # w2 (resident)
                    const_spec((1, Cout_p))]                               # b2
        if residual_mode == "separate":
            in_specs += [const_spec((Cin_p, Cout_p)),                      # wd
                         const_spec((1, Cout_p))]                          # bd

        nbuf_w = 1 if single_buffer_weights else 2
        weight_bytes = sum(int(a.size) * a.dtype.itemsize for a in inputs[1:])
        act_bytes = 2 * TL * (Cin_p + Cout_p) * 2       # double-buffered x/out tiles
        scratch_bytes = (H + TL) * (Cin_p + Cout_p) * 2
        vmem_limit = int(min(0.9 * vmem_cap,
                             max(32 << 20,
                                 nbuf_w * weight_bytes + act_bytes + scratch_bytes
                                 + (8 << 20))))

        return pl.pallas_call(
            kernel,
            out_shape=jax.ShapeDtypeStruct((N, Lp, Cout_p), jnp.bfloat16),
            grid_spec=pltpu.PrefetchScalarGridSpec(
                num_scalar_prefetch=0,
                grid=(N, nL),
                in_specs=in_specs,
                out_specs=pl.BlockSpec((1, TL, Cout_p), lambda n, j: (n, j, 0)),
                scratch_shapes=[
                    pltpu.VMEM((H + TL, Cin_p), jnp.bfloat16),   # x causal window
                    pltpu.VMEM((H + TL, Cout_p), jnp.bfloat16),  # h1 causal window
                ]),
            compiler_params=pltpu.CompilerParams(
                # L axis is sequential (history carried in scratch); batch parallel.
                dimension_semantics=("parallel", "arbitrary"),
                vmem_limit_bytes=vmem_limit),
            cost_estimate=cost,
        )

    try:
        out = make_call(True)(*inputs)
    except Exception:
        # pl.Buffered(1) resident weights unsupported on this jax/Mosaic build:
        # fall back to default double-buffered weight BlockSpecs.
        out = make_call(False)(*inputs)

    out_nlc = out[:, :L, :Cout].astype(out_dtype)
    if channels_last:
        return out_nlc
    return jnp.transpose(out_nlc, (0, 2, 1))      # back to (N, Cout, L)


# ---------------------------------------------------------------------------
# Deterministic parameter init (weight_norm folded to effective weights).
# ---------------------------------------------------------------------------
def init_params(key, n_inputs, n_outputs, kernel_size):
    ks = jax.random.split(key, 8)

    def wn_conv_weight(kv, kg, cout, cin, K):
        # weight_norm: w = g * v / ||v|| (norm over (in, k) per output channel)
        v = 0.01 * jax.random.normal(kv, (cout, cin, K), jnp.float32)
        g = jnp.abs(jax.random.normal(kg, (cout, 1, 1), jnp.float32)) + 0.5
        norm = jnp.sqrt(jnp.sum(v * v, axis=(1, 2), keepdims=True))
        w = g * v / norm
        return jnp.transpose(w, (2, 1, 0))            # (K, Cin, Cout)

    params = {
        "w1": wn_conv_weight(ks[0], ks[1], n_outputs, n_inputs, kernel_size),
        "b1": 0.01 * jax.random.normal(ks[2], (1, n_outputs), jnp.float32),
        "w2": wn_conv_weight(ks[3], ks[4], n_outputs, n_outputs, kernel_size),
        "b2": 0.01 * jax.random.normal(ks[5], (1, n_outputs), jnp.float32),
    }
    if n_inputs != n_outputs:
        wd = 0.01 * jax.random.normal(ks[6], (n_outputs, n_inputs, 1), jnp.float32)
        params["wd"] = jnp.transpose(wd[:, :, 0], (1, 0))        # (Cin, Cout)
        params["bd"] = 0.01 * jax.random.normal(ks[7], (1, n_outputs), jnp.float32)
    else:
        params["wd"] = None
        params["bd"] = None
    return params


# ---------------------------------------------------------------------------
# Pure-JAX reference (mirrors the PyTorch module in eval mode).
# ---------------------------------------------------------------------------
def reference(x, params, *, kernel_size, dilation, bf16_intermediate=False):
    K, dil = kernel_size, dilation
    P = dil * (K - 1)

    def conv(inp, w_kio, b):
        w = jnp.transpose(w_kio, (2, 1, 0))           # (Cout, Cin, K)
        y = lax.conv_general_dilated(inp, w, (1,), [(P, P)], rhs_dilation=(dil,),
                                     dimension_numbers=("NCH", "OIH", "NCH"),
                                     precision=lax.Precision.HIGHEST)
        return y + b.reshape(1, -1, 1)

    def chomp(y):
        return y[:, :, :y.shape[2] - P] if P > 0 else y

    h = jnp.maximum(chomp(conv(x, params["w1"], params["b1"])), 0.0)
    if bf16_intermediate:
        # The kernel feeds conv2 with a bf16 intermediate; model it here.
        h = h.astype(jnp.bfloat16).astype(jnp.float32)
    h = jnp.maximum(chomp(conv(h, params["w2"], params["b2"])), 0.0)
    if params["wd"] is not None:
        res = jnp.einsum("nil,io->nol", x, params["wd"],
                         precision=lax.Precision.HIGHEST) + params["bd"].reshape(1, -1, 1)
    else:
        res = x
    return jnp.maximum(h + res, 0.0)


def _check(key, *, N, Cin, Cout, L, K, dil, l_tile):
    kx, kp = jax.random.split(key)
    x = jax.random.normal(kx, (N, Cin, L), jnp.float32)       # PyTorch NCL input
    params = init_params(kp, Cin, Cout, K)

    out = temporal_block(x, params, kernel_size=K, dilation=dil, l_tile=l_tile)
    out = jax.block_until_ready(out)
    assert out.shape == (N, Cout, L)

    # Reference with bf16-quantized x / conv weights / intermediate activation
    # (the kernel feeds the MXU in bf16 with f32 accumulation; biases stay f32).
    def q(a):
        return a.astype(jnp.bfloat16).astype(jnp.float32)

    pq = dict(params)
    pq["w1"], pq["w2"] = q(params["w1"]), q(params["w2"])
    if params["wd"] is not None:
        pq["wd"] = q(params["wd"])
    ref = reference(q(x), pq, kernel_size=K, dilation=dil, bf16_intermediate=True)

    np.testing.assert_allclose(np.asarray(out.astype(jnp.float32)),
                               np.asarray(ref), rtol=2e-2, atol=2e-2)


if __name__ == "__main__":
    key = jax.random.PRNGKey(0)
    k1, k2, k3 = jax.random.split(key, 3)
    # 1) standard TCN config: downsample fused into conv1's extra MXU columns.
    _check(k1, N=2, Cin=4, Cout=8, L=16, K=3, dil=1, l_tile=512)
    # 2) identity residual, dilation 2, multiple L tiles (cross-tile history carry).
    _check(k2, N=1, Cin=8, Cout=8, L=40, K=3, dil=2, l_tile=16)
    # 3) wide output channels (Cout_p = 256): separate 1x1 downsample matmul path.
    _check(k3, N=2, Cin=4, Cout=136, L=32, K=3, dil=2, l_tile=512)
    print("KERNEL_OK")
</pallas_src>

<mosaic_0001>
module attributes {stable_mosaic.version = 11 : i64} {
  func.func @temporal_block_kernel(%arg0: i32, %arg1: i32, %arg2: memref<1x16x128xbf16, #tpu.memory_space<vmem>>, %arg3: memref<384x256xbf16, #tpu.memory_space<vmem>>, %arg4: memref<1x256xf32, #tpu.memory_space<vmem>>, %arg5: memref<384x128xbf16, #tpu.memory_space<vmem>>, %arg6: memref<1x128xf32, #tpu.memory_space<vmem>>, %arg7: memref<1x16x128xbf16, #tpu.memory_space<vmem>>, %arg8: memref<32x128xbf16, #tpu.memory_space<vmem>>, %arg9: memref<32x128xbf16, #tpu.memory_space<vmem>>) attributes {dimension_semantics = [#tpu.dimension_semantics<parallel>, #tpu.dimension_semantics<arbitrary>], iteration_bounds = array<i64: 2, 1>, scalar_prefetch = 0 : i64, scratch_operands = 2 : i64, tpu.core_type = #tpu.core_type<tc>, window_params = [{transform_indices = @transform_0, window_bounds = array<i64: 1, 16, 128>}, {pipeline_mode = #tpu.pipeline_mode<synchronous>, transform_indices = @transform_1, window_bounds = array<i64: 384, 256>}, {pipeline_mode = #tpu.pipeline_mode<synchronous>, transform_indices = @transform_2, window_bounds = array<i64: 1, 256>}, {pipeline_mode = #tpu.pipeline_mode<synchronous>, transform_indices = @transform_3, window_bounds = array<i64: 384, 128>}, {pipeline_mode = #tpu.pipeline_mode<synchronous>, transform_indices = @transform_4, window_bounds = array<i64: 1, 128>}, {transform_indices = @transform_5, window_bounds = array<i64: 1, 16, 128>}]} {
    %c0_i32 = arith.constant 0 : i32
    %0 = arith.cmpi eq, %arg1, %c0_i32 : i32
    %1 = arith.extui %0 : i1 to i32
    %c0_i32_0 = arith.constant 0 : i32
    %2 = arith.cmpi ne, %1, %c0_i32_0 : i32
    scf.if %2 {
      %cst_43 = arith.constant 0.000000e+00 : bf16
      %57 = vector.broadcast %cst_43 : bf16 to vector<16x128xbf16>
      %c0_44 = arith.constant 0 : index
      %c0_45 = arith.constant 0 : index
      %58 = vector.load %arg8[%c0_44, %c0_45] : memref<32x128xbf16, #tpu.memory_space<vmem>>, vector<16x128xbf16>
      tpu.vector_store %arg8[%c0_44, %c0_45], %57 {strides = array<i32>} : memref<32x128xbf16, #tpu.memory_space<vmem>>, vector<16x128xbf16>,
      %cst_46 = arith.constant 0.000000e+00 : bf16
      %59 = vector.broadcast %cst_46 : bf16 to vector<16x128xbf16>
      %c0_47 = arith.constant 0 : index
      %c0_48 = arith.constant 0 : index
      %60 = vector.load %arg9[%c0_47, %c0_48] : memref<32x128xbf16, #tpu.memory_space<vmem>>, vector<16x128xbf16>
      tpu.vector_store %arg9[%c0_47, %c0_48], %59 {strides = array<i32>} : memref<32x128xbf16, #tpu.memory_space<vmem>>, vector<16x128xbf16>,
    } else {
    }
    %c0 = arith.constant 0 : index
    %c0_1 = arith.constant 0 : index
    %c0_2 = arith.constant 0 : index
    %3 = vector.load %arg2[%c0, %c0_1, %c0_2] : memref<1x16x128xbf16, #tpu.memory_space<vmem>>, vector<1x16x128xbf16>
    %4 = vector.shape_cast %3 : vector<1x16x128xbf16> to vector<16x128xbf16>
    %c16 = arith.constant 16 : index
    %c0_3 = arith.constant 0 : index
    %5 = vector.load %arg8[%c16, %c0_3] : memref<32x128xbf16, #tpu.memory_space<vmem>>, vector<16x128xbf16>
    tpu.vector_store %arg8[%c16, %c0_3], %4 {strides = array<i32>} : memref<32x128xbf16, #tpu.memory_space<vmem>>, vector<16x128xbf16>,
    %c0_4 = arith.constant 0 : index
    %c0_5 = arith.constant 0 : index
    %6 = vector.load %arg4[%c0_4, %c0_5] : memref<1x256xf32, #tpu.memory_space<vmem>>, vector<1x256xf32>
    %7 = vector.shape_cast %6 : vector<1x256xf32> to vector<256xf32>
    %8 = vector.shape_cast %7 : vector<256xf32> to vector<1x256xf32>
    %9 = vector.broadcast %8 : vector<1x256xf32> to vector<16x256xf32>
    %c14 = arith.constant 14 : index
    %c0_6 = arith.constant 0 : index
    %10 = vector.load %arg8[%c14, %c0_6] : memref<32x128xbf16, #tpu.memory_space<vmem>>, vector<16x128xbf16>
    %c0_7 = arith.constant 0 : index
    %c0_8 = arith.constant 0 : index
    %11 = vector.load %arg3[%c0_7, %c0_8] : memref<384x256xbf16, #tpu.memory_space<vmem>>, vector<128x256xbf16>
    %cst = arith.constant dense<0.000000e+00> : vector<16x256xf32>
    %12 = tpu.matmul %10, %11, %cst {dimension_numbers = #tpu.dot_dimension_numbers<[1], [0], [0], [1], [0, 0, 1, 1], [], []>} : vector<16x128xbf16>, vector<128x256xbf16>, vector<16x256xf32> -> vector<16x256xf32>
    %13 = arith.addf %9, %12 : vector<16x256xf32>
    %c15 = arith.constant 15 : index
    %c0_9 = arith.constant 0 : index
    %14 = vector.load %arg8[%c15, %c0_9] : memref<32x128xbf16, #tpu.memory_space<vmem>>, vector<16x128xbf16>
    %c128 = arith.constant 128 : index
    %c0_10 = arith.constant 0 : index
    %15 = vector.load %arg3[%c128, %c0_10] : memref<384x256xbf16, #tpu.memory_space<vmem>>, vector<128x256xbf16>
    %cst_11 = arith.constant dense<0.000000e+00> : vector<16x256xf32>
    %16 = tpu.matmul %14, %15, %cst_11 {dimension_numbers = #tpu.dot_dimension_numbers<[1], [0], [0], [1], [0, 0, 1, 1], [], []>} : vector<16x128xbf16>, vector<128x256xbf16>, vector<16x256xf32> -> vector<16x256xf32>
    %17 = arith.addf %13, %16 : vector<16x256xf32>
    %c16_12 = arith.constant 16 : index
    %c0_13 = arith.constant 0 : index
    %18 = vector.load %arg8[%c16_12, %c0_13] : memref<32x128xbf16, #tpu.memory_space<vmem>>, vector<16x128xbf16>
    %c256 = arith.constant 256 : index
    %c0_14 = arith.constant 0 : index
    %19 = vector.load %arg3[%c256, %c0_14] : memref<384x256xbf16, #tpu.memory_space<vmem>>, vector<128x256xbf16>
    %cst_15 = arith.constant dense<0.000000e+00> : vector<16x256xf32>
    %20 = tpu.matmul %18, %19, %cst_15 {dimension_numbers = #tpu.dot_dimension_numbers<[1], [0], [0], [1], [0, 0, 1, 1], [], []>} : vector<16x128xbf16>, vector<128x256xbf16>, vector<16x256xf32> -> vector<16x256xf32>
    %21 = arith.addf %17, %20 : vector<16x256xf32>
    %22 = vector.extract_strided_slice %21 {offsets = [0, 0], sizes = [16, 128], strides = [1, 1]} : vector<16x256xf32> to vector<16x128xf32>
    %cst_16 = arith.constant 0.000000e+00 : f32
    %23 = vector.broadcast %cst_16 : f32 to vector<16x128xf32>
    %24 = arith.maximumf %22, %23 : vector<16x128xf32>
    %25 = vector.extract_strided_slice %21 {offsets = [0, 128], sizes = [16, 128], strides = [1, 1]} : vector<16x256xf32> to vector<16x128xf32>
    %26 = arith.truncf %24 : vector<16x128xf32> to vector<16x128xbf16>
    %c16_17 = arith.constant 16 : index
    %c0_18 = arith.constant 0 : index
    %27 = vector.load %arg9[%c16_17, %c0_18] : memref<32x128xbf16, #tpu.memory_space<vmem>>, vector<16x128xbf16>
    tpu.vector_store %arg9[%c16_17, %c0_18], %26 {strides = array<i32>} : memref<32x128xbf16, #tpu.memory_space<vmem>>, vector<16x128xbf16>,
    %c0_19 = arith.constant 0 : index
    %c0_20 = arith.constant 0 : index
    %28 = vector.load %arg6[%c0_19, %c0_20] : memref<1x128xf32, #tpu.memory_space<vmem>>, vector<1x128xf32>
    %29 = vector.shape_cast %28 : vector<1x128xf32> to vector<128xf32>
    %30 = vector.shape_cast %29 : vector<128xf32> to vector<1x128xf32>
    %31 = vector.broadcast %30 : vector<1x128xf32> to vector<16x128xf32>
    %c14_21 = arith.constant 14 : index
    %c0_22 = arith.constant 0 : index
    %32 = vector.load %arg9[%c14_21, %c0_22] : memref<32x128xbf16, #tpu.memory_space<vmem>>, vector<16x128xbf16>
    %c0_23 = arith.constant 0 : index
    %c0_24 = arith.constant 0 : index
    %33 = vector.load %arg5[%c0_23, %c0_24] : memref<384x128xbf16, #tpu.memory_space<vmem>>, vector<128x128xbf16>
    %cst_25 = arith.constant dense<0.000000e+00> : vector<16x128xf32>
    %34 = tpu.matmul %32, %33, %cst_25 {dimension_numbers = #tpu.dot_dimension_numbers<[1], [0], [0], [1], [0, 0, 1, 1], [], []>} : vector<16x128xbf16>, vector<128x128xbf16>, vector<16x128xf32> -> vector<16x128xf32>
    %35 = arith.addf %31, %34 : vector<16x128xf32>
    %c15_26 = arith.constant 15 : index
    %c0_27 = arith.constant 0 : index
    %36 = vector.load %arg9[%c15_26, %c0_27] : memref<32x128xbf16, #tpu.memory_space<vmem>>, vector<16x128xbf16>
    %c128_28 = arith.constant 128 : index
    %c0_29 = arith.constant 0 : index
    %37 = vector.load %arg5[%c128_28, %c0_29] : memref<384x128xbf16, #tpu.memory_space<vmem>>, vector<128x128xbf16>
    %cst_30 = arith.constant dense<0.000000e+00> : vector<16x128xf32>
    %38 = tpu.matmul %36, %37, %cst_30 {dimension_numbers = #tpu.dot_dimension_numbers<[1], [0], [0], [1], [0, 0, 1, 1], [], []>} : vector<16x128xbf16>, vector<128x128xbf16>, vector<16x128xf32> -> vector<16x128xf32>
    %39 = arith.addf %35, %38 : vector<16x128xf32>
    %c16_31 = arith.constant 16 : index
    %c0_32 = arith.constant 0 : index
    %40 = vector.load %arg9[%c16_31, %c0_32] : memref<32x128xbf16, #tpu.memory_space<vmem>>, vector<16x128xbf16>
    %c256_33 = arith.constant 256 : index
    %c0_34 = arith.constant 0 : index
    %41 = vector.load %arg5[%c256_33, %c0_34] : memref<384x128xbf16, #tpu.memory_space<vmem>>, vector<128x128xbf16>
    %cst_35 = arith.constant dense<0.000000e+00> : vector<16x128xf32>
    %42 = tpu.matmul %40, %41, %cst_35 {dimension_numbers = #tpu.dot_dimension_numbers<[1], [0], [0], [1], [0, 0, 1, 1], [], []>} : vector<16x128xbf16>, vector<128x128xbf16>, vector<16x128xf32> -> vector<16x128xf32>
    %43 = arith.addf %39, %42 : vector<16x128xf32>
    %cst_36 = arith.constant 0.000000e+00 : f32
    %44 = vector.broadcast %cst_36 : f32 to vector<16x128xf32>
    %45 = arith.maximumf %43, %44 : vector<16x128xf32>
    %46 = arith.addf %45, %25 : vector<16x128xf32>
    %cst_37 = arith.constant 0.000000e+00 : f32
    %47 = vector.broadcast %cst_37 : f32 to vector<16x128xf32>
    %48 = arith.maximumf %46, %47 : vector<16x128xf32>
    %49 = arith.truncf %48 : vector<16x128xf32> to vector<16x128xbf16>
    %c0_38 = arith.constant 0 : index
    %c0_39 = arith.constant 0 : index
    %c0_40 = arith.constant 0 : index
    %50 = vector.load %arg7[%c0_38, %c0_39, %c0_40] : memref<1x16x128xbf16, #tpu.memory_space<vmem>>, vector<1x16x128xbf16>
    %51 = vector.shape_cast %50 : vector<1x16x128xbf16> to vector<16x128xbf16>
    %52 = vector.shape_cast %49 : vector<16x128xbf16> to vector<1x16x128xbf16>
    tpu.vector_store %arg7[%c0_38, %c0_39, %c0_40], %52 {strides = array<i32>} : memref<1x16x128xbf16, #tpu.memory_space<vmem>>, vector<1x16x128xbf16>,
    %c1_i32 = arith.constant 1 : i32
    %53 = arith.addi %arg1, %c1_i32 : i32
    %c1_i32_41 = arith.constant 1 : i32
    %54 = arith.cmpi slt, %53, %c1_i32_41 : i32
    %55 = arith.extui %54 : i1 to i32
    %c0_i32_42 = arith.constant 0 : i32
    %56 = arith.cmpi ne, %55, %c0_i32_42 : i32
    scf.if %56 {
      %c16_43 = arith.constant 16 : index
      %c0_44 = arith.constant 0 : index
      %57 = vector.load %arg8[%c16_43, %c0_44] : memref<32x128xbf16, #tpu.memory_space<vmem>>, vector<16x128xbf16>
      %c0_45 = arith.constant 0 : index
      %c0_46 = arith.constant 0 : index
      %58 = vector.load %arg8[%c0_45, %c0_46] : memref<32x128xbf16, #tpu.memory_space<vmem>>, vector<16x128xbf16>
      tpu.vector_store %arg8[%c0_45, %c0_46], %57 {strides = array<i32>} : memref<32x128xbf16, #tpu.memory_space<vmem>>, vector<16x128xbf16>,
      %c16_47 = arith.constant 16 : index
      %c0_48 = arith.constant 0 : index
      %59 = vector.load %arg9[%c16_47, %c0_48] : memref<32x128xbf16, #tpu.memory_space<vmem>>, vector<16x128xbf16>
      %c0_49 = arith.constant 0 : index
      %c0_50 = arith.constant 0 : index
      %60 = vector.load %arg9[%c0_49, %c0_50] : memref<32x128xbf16, #tpu.memory_space<vmem>>, vector<16x128xbf16>
      tpu.vector_store %arg9[%c0_49, %c0_50], %59 {strides = array<i32>} : memref<32x128xbf16, #tpu.memory_space<vmem>>, vector<16x128xbf16>,
    } else {
    }
    return
  }
  func.func @transform_0(%arg0: i32, %arg1: i32) -> (i32, i32, i32) {
    %c0_i32 = arith.constant 0 : i32
    %c0_i32_0 = arith.constant 0 : i32
    return %arg0, %arg1, %c0_i32 : i32, i32, i32
  }
  func.func @transform_1(%arg0: i32, %arg1: i32) -> (i32, i32) {
    %c0_i32 = arith.constant 0 : i32
    %c0_i32_0 = arith.constant 0 : i32
    %c0_i32_1 = arith.constant 0 : i32
    return %c0_i32, %c0_i32_0 : i32, i32
  }
  func.func @transform_2(%arg0: i32, %arg1: i32) -> (i32, i32) {
    %c0_i32 = arith.constant 0 : i32
    %c0_i32_0 = arith.constant 0 : i32
    %c0_i32_1 = arith.constant 0 : i32
    return %c0_i32, %c0_i32_0 : i32, i32
  }
  func.func @transform_3(%arg0: i32, %arg1: i32) -> (i32, i32) {
    %c0_i32 = arith.constant 0 : i32
    %c0_i32_0 = arith.constant 0 : i32
    %c0_i32_1 = arith.constant 0 : i32
    return %c0_i32, %c0_i32_0 : i32, i32
  }
  func.func @transform_4(%arg0: i32, %arg1: i32) -> (i32, i32) {
    %c0_i32 = arith.constant 0 : i32
    %c0_i32_0 = arith.constant 0 : i32
    %c0_i32_1 = arith.constant 0 : i32
    return %c0_i32, %c0_i32_0 : i32, i32
  }
  func.func @transform_5(%arg0: i32, %arg1: i32) -> (i32, i32, i32) {
    %c0_i32 = arith.constant 0 : i32
    %c0_i32_0 = arith.constant 0 : i32
    return %arg0, %arg1, %c0_i32 : i32, i32, i32
  }
}

module attributes {stable_mosaic.version = 11 : i64} {
  func.func @temporal_block_kernel(%arg0: i32, %arg1: i32, %arg2: memref<1x16x128xbf16, #tpu.memory_space<vmem>>, %arg3: memref<384x256xbf16, #tpu.memory_space<vmem>>, %arg4: memref<1x256xf32, #tpu.memory_space<vmem>>, %arg5: memref<384x128xbf16, #tpu.memory_space<vmem>>, %arg6: memref<1x128xf32, #tpu.memory_space<vmem>>, %arg7: memref<1x16x128xbf16, #tpu.memory_space<vmem>>, %arg8: memref<32x128xbf16, #tpu.memory_space<vmem>>, %arg9: memref<32x128xbf16, #tpu.memory_space<vmem>>) attributes {dimension_semantics = [#tpu.dimension_semantics<parallel>, #tpu.dimension_semantics<arbitrary>], iteration_bounds = array<i64: 2, 1>, scalar_prefetch = 0 : i64, scratch_operands = 2 : i64, tpu.core_type = #tpu.core_type<tc>, window_params = [{transform_indices = @transform_0, window_bounds = array<i64: 1, 16, 128>}, {pipeline_mode = #tpu.pipeline_mode<synchronous>, transform_indices = @transform_1, window_bounds = array<i64: 384, 256>}, {pipeline_mode = #tpu.pipeline_mode<synchronous>, transform_indices = @transform_2, window_bounds = array<i64: 1, 256>}, {pipeline_mode = #tpu.pipeline_mode<synchronous>, transform_indices = @transform_3, window_bounds = array<i64: 384, 128>}, {pipeline_mode = #tpu.pipeline_mode<synchronous>, transform_indices = @transform_4, window_bounds = array<i64: 1, 128>}, {transform_indices = @transform_5, window_bounds = array<i64: 1, 16, 128>}]} {
    %c0_i32 = arith.constant 0 : i32
    %0 = arith.cmpi eq, %arg1, %c0_i32 : i32
    %1 = arith.extui %0 : i1 to i32
    %c0_i32_0 = arith.constant 0 : i32
    %2 = arith.cmpi ne, %1, %c0_i32_0 : i32
    scf.if %2 {
      %cst_43 = arith.constant 0.000000e+00 : bf16
      %57 = vector.broadcast %cst_43 : bf16 to vector<16x128xbf16>
      %c0_44 = arith.constant 0 : index
      %c0_45 = arith.constant 0 : index
      %58 = vector.load %arg8[%c0_44, %c0_45] : memref<32x128xbf16, #tpu.memory_space<vmem>>, vector<16x128xbf16>
      tpu.vector_store %arg8[%c0_44, %c0_45], %57 {strides = array<i32>} : memref<32x128xbf16, #tpu.memory_space<vmem>>, vector<16x128xbf16>,
      %cst_46 = arith.constant 0.000000e+00 : bf16
      %59 = vector.broadcast %cst_46 : bf16 to vector<16x128xbf16>
      %c0_47 = arith.constant 0 : index
      %c0_48 = arith.constant 0 : index
      %60 = vector.load %arg9[%c0_47, %c0_48] : memref<32x128xbf16, #tpu.memory_space<vmem>>, vector<16x128xbf16>
      tpu.vector_store %arg9[%c0_47, %c0_48], %59 {strides = array<i32>} : memref<32x128xbf16, #tpu.memory_space<vmem>>, vector<16x128xbf16>,
    } else {
    }
    %c0 = arith.constant 0 : index
    %c0_1 = arith.constant 0 : index
    %c0_2 = arith.constant 0 : index
    %3 = vector.load %arg2[%c0, %c0_1, %c0_2] : memref<1x16x128xbf16, #tpu.memory_space<vmem>>, vector<1x16x128xbf16>
    %4 = vector.shape_cast %3 : vector<1x16x128xbf16> to vector<16x128xbf16>
    %c16 = arith.constant 16 : index
    %c0_3 = arith.constant 0 : index
    %5 = vector.load %arg8[%c16, %c0_3] : memref<32x128xbf16, #tpu.memory_space<vmem>>, vector<16x128xbf16>
    tpu.vector_store %arg8[%c16, %c0_3], %4 {strides = array<i32>} : memref<32x128xbf16, #tpu.memory_space<vmem>>, vector<16x128xbf16>,
    %c0_4 = arith.constant 0 : index
    %c0_5 = arith.constant 0 : index
    %6 = vector.load %arg4[%c0_4, %c0_5] : memref<1x256xf32, #tpu.memory_space<vmem>>, vector<1x256xf32>
    %7 = vector.shape_cast %6 : vector<1x256xf32> to vector<256xf32>
    %8 = vector.shape_cast %7 : vector<256xf32> to vector<1x256xf32>
    %9 = vector.broadcast %8 : vector<1x256xf32> to vector<16x256xf32>
    %c14 = arith.constant 14 : index
    %c0_6 = arith.constant 0 : index
    %10 = vector.load %arg8[%c14, %c0_6] : memref<32x128xbf16, #tpu.memory_space<vmem>>, vector<16x128xbf16>
    %c0_7 = arith.constant 0 : index
    %c0_8 = arith.constant 0 : index
    %11 = vector.load %arg3[%c0_7, %c0_8] : memref<384x256xbf16, #tpu.memory_space<vmem>>, vector<128x256xbf16>
    %cst = arith.constant dense<0.000000e+00> : vector<16x256xf32>
    %12 = tpu.matmul %10, %11, %cst {dimension_numbers = #tpu.dot_dimension_numbers<[1], [0], [0], [1], [0, 0, 1, 1], [], []>} : vector<16x128xbf16>, vector<128x256xbf16>, vector<16x256xf32> -> vector<16x256xf32>
    %13 = arith.addf %9, %12 : vector<16x256xf32>
    %c15 = arith.constant 15 : index
    %c0_9 = arith.constant 0 : index
    %14 = vector.load %arg8[%c15, %c0_9] : memref<32x128xbf16, #tpu.memory_space<vmem>>, vector<16x128xbf16>
    %c128 = arith.constant 128 : index
    %c0_10 = arith.constant 0 : index
    %15 = vector.load %arg3[%c128, %c0_10] : memref<384x256xbf16, #tpu.memory_space<vmem>>, vector<128x256xbf16>
    %cst_11 = arith.constant dense<0.000000e+00> : vector<16x256xf32>
    %16 = tpu.matmul %14, %15, %cst_11 {dimension_numbers = #tpu.dot_dimension_numbers<[1], [0], [0], [1], [0, 0, 1, 1], [], []>} : vector<16x128xbf16>, vector<128x256xbf16>, vector<16x256xf32> -> vector<16x256xf32>
    %17 = arith.addf %13, %16 : vector<16x256xf32>
    %c16_12 = arith.constant 16 : index
    %c0_13 = arith.constant 0 : index
    %18 = vector.load %arg8[%c16_12, %c0_13] : memref<32x128xbf16, #tpu.memory_space<vmem>>, vector<16x128xbf16>
    %c256 = arith.constant 256 : index
    %c0_14 = arith.constant 0 : index
    %19 = vector.load %arg3[%c256, %c0_14] : memref<384x256xbf16, #tpu.memory_space<vmem>>, vector<128x256xbf16>
    %cst_15 = arith.constant dense<0.000000e+00> : vector<16x256xf32>
    %20 = tpu.matmul %18, %19, %cst_15 {dimension_numbers = #tpu.dot_dimension_numbers<[1], [0], [0], [1], [0, 0, 1, 1], [], []>} : vector<16x128xbf16>, vector<128x256xbf16>, vector<16x256xf32> -> vector<16x256xf32>
    %21 = arith.addf %17, %20 : vector<16x256xf32>
    %22 = vector.extract_strided_slice %21 {offsets = [0, 0], sizes = [16, 128], strides = [1, 1]} : vector<16x256xf32> to vector<16x128xf32>
    %cst_16 = arith.constant 0.000000e+00 : f32
    %23 = vector.broadcast %cst_16 : f32 to vector<16x128xf32>
    %24 = arith.maximumf %22, %23 : vector<16x128xf32>
    %25 = vector.extract_strided_slice %21 {offsets = [0, 128], sizes = [16, 128], strides = [1, 1]} : vector<16x256xf32> to vector<16x128xf32>
    %26 = arith.truncf %24 : vector<16x128xf32> to vector<16x128xbf16>
    %c16_17 = arith.constant 16 : index
    %c0_18 = arith.constant 0 : index
    %27 = vector.load %arg9[%c16_17, %c0_18] : memref<32x128xbf16, #tpu.memory_space<vmem>>, vector<16x128xbf16>
    tpu.vector_store %arg9[%c16_17, %c0_18], %26 {strides = array<i32>} : memref<32x128xbf16, #tpu.memory_space<vmem>>, vector<16x128xbf16>,
    %c0_19 = arith.constant 0 : index
    %c0_20 = arith.constant 0 : index
    %28 = vector.load %arg6[%c0_19, %c0_20] : memref<1x128xf32, #tpu.memory_space<vmem>>, vector<1x128xf32>
    %29 = vector.shape_cast %28 : vector<1x128xf32> to vector<128xf32>
    %30 = vector.shape_cast %29 : vector<128xf32> to vector<1x128xf32>
    %31 = vector.broadcast %30 : vector<1x128xf32> to vector<16x128xf32>
    %c14_21 = arith.constant 14 : index
    %c0_22 = arith.constant 0 : index
    %32 = vector.load %arg9[%c14_21, %c0_22] : memref<32x128xbf16, #tpu.memory_space<vmem>>, vector<16x128xbf16>
    %c0_23 = arith.constant 0 : index
    %c0_24 = arith.constant 0 : index
    %33 = vector.load %arg5[%c0_23, %c0_24] : memref<384x128xbf16, #tpu.memory_space<vmem>>, vector<128x128xbf16>
    %cst_25 = arith.constant dense<0.000000e+00> : vector<16x128xf32>
    %34 = tpu.matmul %32, %33, %cst_25 {dimension_numbers = #tpu.dot_dimension_numbers<[1], [0], [0], [1], [0, 0, 1, 1], [], []>} : vector<16x128xbf16>, vector<128x128xbf16>, vector<16x128xf32> -> vector<16x128xf32>
    %35 = arith.addf %31, %34 : vector<16x128xf32>
    %c15_26 = arith.constant 15 : index
    %c0_27 = arith.constant 0 : index
    %36 = vector.load %arg9[%c15_26, %c0_27] : memref<32x128xbf16, #tpu.memory_space<vmem>>, vector<16x128xbf16>
    %c128_28 = arith.constant 128 : index
    %c0_29 = arith.constant 0 : index
    %37 = vector.load %arg5[%c128_28, %c0_29] : memref<384x128xbf16, #tpu.memory_space<vmem>>, vector<128x128xbf16>
    %cst_30 = arith.constant dense<0.000000e+00> : vector<16x128xf32>
    %38 = tpu.matmul %36, %37, %cst_30 {dimension_numbers = #tpu.dot_dimension_numbers<[1], [0], [0], [1], [0, 0, 1, 1], [], []>} : vector<16x128xbf16>, vector<128x128xbf16>, vector<16x128xf32> -> vector<16x128xf32>
    %39 = arith.addf %35, %38 : vector<16x128xf32>
    %c16_31 = arith.constant 16 : index
    %c0_32 = arith.constant 0 : index
    %40 = vector.load %arg9[%c16_31, %c0_32] : memref<32x128xbf16, #tpu.memory_space<vmem>>, vector<16x128xbf16>
    %c256_33 = arith.constant 256 : index
    %c0_34 = arith.constant 0 : index
    %41 = vector.load %arg5[%c256_33, %c0_34] : memref<384x128xbf16, #tpu.memory_space<vmem>>, vector<128x128xbf16>
    %cst_35 = arith.constant dense<0.000000e+00> : vector<16x128xf32>
    %42 = tpu.matmul %40, %41, %cst_35 {dimension_numbers = #tpu.dot_dimension_numbers<[1], [0], [0], [1], [0, 0, 1, 1], [], []>} : vector<16x128xbf16>, vector<128x128xbf16>, vector<16x128xf32> -> vector<16x128xf32>
    %43 = arith.addf %39, %42 : vector<16x128xf32>
    %cst_36 = arith.constant 0.000000e+00 : f32
    %44 = vector.broadcast %cst_36 : f32 to vector<16x128xf32>
    %45 = arith.maximumf %43, %44 : vector<16x128xf32>
    %46 = arith.addf %45, %25 : vector<16x128xf32>
    %cst_37 = arith.constant 0.000000e+00 : f32
    %47 = vector.broadcast %cst_37 : f32 to vector<16x128xf32>
    %48 = arith.maximumf %46, %47 : vector<16x128xf32>
    %49 = arith.truncf %48 : vector<16x128xf32> to vector<16x128xbf16>
    %c0_38 = arith.constant 0 : index
    %c0_39 = arith.constant 0 : index
    %c0_40 = arith.constant 0 : index
    %50 = vector.load %arg7[%c0_38, %c0_39, %c0_40] : memref<1x16x128xbf16, #tpu.memory_space<vmem>>, vector<1x16x128xbf16>
    %51 = vector.shape_cast %50 : vector<1x16x128xbf16> to vector<16x128xbf16>
    %52 = vector.shape_cast %49 : vector<16x128xbf16> to vector<1x16x128xbf16>
    tpu.vector_store %arg7[%c0_38, %c0_39, %c0_40], %52 {strides = array<i32>} : memref<1x16x128xbf16, #tpu.memory_space<vmem>>, vector<1x16x128xbf16>,
    %c1_i32 = arith.constant 1 : i32
    %53 = arith.addi %arg1, %c1_i32 : i32
    %c1_i32_41 = arith.constant 1 : i32
    %54 = arith.cmpi slt, %53, %c1_i32_41 : i32
    %55 = arith.extui %54 : i1 to i32
    %c0_i32_42 = arith.constant 0 : i32
    %56 = arith.cmpi ne, %55, %c0_i32_42 : i32
    scf.if %56 {
      %c16_43 = arith.constant 16 : index
      %c0_44 = arith.constant 0 : index
      %57 = vector.load %arg8[%c16_43, %c0_44] : memref<32x128xbf16, #tpu.memory_space<vmem>>, vector<16x128xbf16>
      %c0_45 = arith.constant 0 : index
      %c0_46 = arith.constant 0 : index
      %58 = vector.load %arg8[%c0_45, %c0_46] : memref<32x128xbf16, #tpu.memory_space<vmem>>, vector<16x128xbf16>
      tpu.vector_store %arg8[%c0_45, %c0_46], %57 {strides = array<i32>} : memref<32x128xbf16, #tpu.memory_space<vmem>>, vector<16x128xbf16>,
      %c16_47 = arith.constant 16 : index
      %c0_48 = arith.constant 0 : index
      %59 = vector.load %arg9[%c16_47, %c0_48] : memref<32x128xbf16, #tpu.memory_space<vmem>>, vector<16x128xbf16>
      %c0_49 = arith.constant 0 : index
      %c0_50 = arith.constant 0 : index
      %60 = vector.load %arg9[%c0_49, %c0_50] : memref<32x128xbf16, #tpu.memory_space<vmem>>, vector<16x128xbf16>
      tpu.vector_store %arg9[%c0_49, %c0_50], %59 {strides = array<i32>} : memref<32x128xbf16, #tpu.memory_space<vmem>>, vector<16x128xbf16>,
    } else {
    }
    return
  }
  func.func @transform_0(%arg0: i32, %arg1: i32) -> (i32, i32, i32) {
    %c0_i32 = arith.constant 0 : i32
    %c0_i32_0 = arith.constant 0 : i32
    return %arg0, %arg1, %c0_i32 : i32, i32, i32
  }
  func.func @transform_1(%arg0: i32, %arg1: i32) -> (i32, i32) {
    %c0_i32 = arith.constant 0 : i32
    %c0_i32_0 = arith.constant 0 : i32
    %c0_i32_1 = arith.constant 0 : i32
    return %c0_i32, %c0_i32_0 : i32, i32
  }
  func.func @transform_2(%arg0: i32, %arg1: i32) -> (i32, i32) {
    %c0_i32 = arith.constant 0 : i32
    %c0_i32_0 = arith.constant 0 : i32
    %c0_i32_1 = arith.constant 0 : i32
    return %c0_i32, %c0_i32_0 : i32, i32
  }
  func.func @transform_3(%arg0: i32, %arg1: i32) -> (i32, i32) {
    %c0_i32 = arith.constant 0 : i32
    %c0_i32_0 = arith.constant 0 : i32
    %c0_i32_1 = arith.constant 0 : i32
    return %c0_i32, %c0_i32_0 : i32, i32
  }
  func.func @transform_4(%arg0: i32, %arg1: i32) -> (i32, i32) {
    %c0_i32 = arith.constant 0 : i32
    %c0_i32_0 = arith.constant 0 : i32
    %c0_i32_1 = arith.constant 0 : i32
    return %c0_i32, %c0_i32_0 : i32, i32
  }
  func.func @transform_5(%arg0: i32, %arg1: i32) -> (i32, i32, i32) {
    %c0_i32 = arith.constant 0 : i32
    %c0_i32_0 = arith.constant 0 : i32
    return %arg0, %arg1, %c0_i32 : i32, i32, i32
  }
}

</mosaic_0001>

<bundles_post_ra>
// kernel: tpu_custom_call.1
= control target key start
LH: loop header
LB: loop body
LE: loop exit
PB: predicated region body
PF: predicated region fallthrough
CT: control target
= control target key end

     0   :  { %10 = vsyncpa [#allocation5], 0  ;;  %s2229_s0 = inlined_call_operand.hbm [shape: bf16[2,16,128], index: 0, kind: input, shape index: {}]   ;;  %s2230_s1 = inlined_call_operand.hbm [shape: bf16[384,256], index: 1, kind: input, shape index: {}]   ;;  %s2231_s2 = inlined_call_operand.vmem [shape: f32[1,256], index: 2, kind: input, shape index: {}]   ;;  %s2232_s3 = inlined_call_operand.hbm [shape: bf16[384,128], index: 3, kind: input, shape index: {}]   ;;  %s2233_s4 = inlined_call_operand.vmem [shape: f32[1,128], index: 4, kind: input, shape index: {}]   ;;  %s2234_s5 = inlined_call_operand.hbm [shape: bf16[2,16,128], index: 5, kind: output, shape index: {}]  }
   0x1   :  { %12 = vsyncpa [#allocation5 + $0x1], 0 }
   0x2   :  { %13 = vsyncpa [#allocation8], 0 }
   0x3   :  { %14 = vsyncpa [#allocation6], 0 }
   0x4   :  { %16 = vsyncpa [#allocation6 + $0x1], 0  ;;  %s1893_s18 = smov 0   ;;  %s1895_s19 = smov 0  }
   0x5   :  { %s1897_s20 = smov 0   ;;  %s1899_s21 = smov 0  }
   0x6   :  { %s1901_s22 = smov 0   ;;  %s1903_s23 = smov 0  }
   0x7 LB: > { %s1274_s24 = sadd.s32 4294967295, %s1848_s23   ;;  %s1275_s25 = sadd.s32 4294967294, %s1848_s23   ;;  %s1848_s23 = sphi %s1903_s23, %s22_s23   ;;  %s1844_s22 = sphi %s1901_s22, %s2258_s22   ;;  %s1840_s21 = sphi %s1899_s21, %s2257_s21   ;;  %s1836_s20 = sphi %s1897_s20, %s2256_s20   ;;  %s1832_s19 = sphi %s1895_s19, %s2255_s19   ;;  %s1828_s18 = sphi %s1893_s18, %s2254_s18  }
   0x8   : > { %p56_p0 = scmp.ne.s32.totalorder %s1832_s19, %s1828_s18  ;;  %p1927_p1 = scmp.eq.s32.totalorder %s1274_s24, 0 }
   0x9   : > { %p1931_p2 = scmp.eq.s32.totalorder %s1274_s24, 1  ;;  %p172_p3 = scmp.eq.s32.totalorder %s1275_s25, 1 }
   0xa   : > { %s2240_s26 = scalar_select %p1927_p1, 1, 0 }
   0xb   : > { %p1937_p4 = por %p1927_p1, %p56_p0  ;;  %p1276_p5 = scmp.ge.s32.totalorder %s1848_s23, 1 }
   0xc   : > { %p1942_p6 = por %p172_p3, %p56_p0  ;;  %p179_p7 = scmp.lt.s32.totalorder %s1848_s23, 3 }
   0xd   : > { %s2242_s28 = scalar_select %p1937_p4, 1, 0 }
   0xe   : > { %s2243_s29 = scalar_select %p1942_p6, 1, 0 }
   0xf   : > { %p1947_p8 = pnand %p1276_p5, %p179_p7  ;;  %s1850_s6 = smov [#allocation7]  }
  0x10   : > { %s191_s7 = sshll.u32 %s1850_s6, 4  ;;  %s1851_s9 = smov [#allocation9]   ;;  %s1951_s7 = int_to_ptr.vmem [resolvable:$true] %s191_s7 }
  0x11   : > { %p1499_p9 = pneg %p1947_p8  ;;  %s207_s10 = sshll.u32 %s1851_s9, 4  ;;  %s1962_s10 = int_to_ptr.vmem [resolvable:$true] %s207_s10 }
  0x12   : > { %s1676_s13 = scalar_lea.hbm %s2230_s1, 6144 }
  0x13   : > { %p1958_p11 = pnand %p1499_p9, %p1927_p1  ;;  %p1677_p12 = scmp.ne.s32.totalorder %s2230_s1, %s1676_s13 }
  0x14   : > { %p1683_p5 = scmp.lt.u32.totalorder %s1676_s13, %s2230_s1 }
  0x15   : > { %p1678_p13 = pneg %p1958_p11 }
  0x17   : > { %p1679_p0 = pnand %p1678_p13, %p1677_p12 }
  0x19   : > { %p1680_p3 = pneg %p1679_p0 }
  0x1b   : > { %p1685_p7 = pnand %p1683_p5, %p1680_p3 }
  0x1d   : > { %1688 = shalt.err (!%p1685_p7)
}
  0x1e   : > { %s1689_s24 = scalar_lea.vmem %s1951_s7, 6144  ;;  %p1697_p1 = scmp.lt.s32.totalorder %s1951_s7, %s1951_s7 }
  0x1f   : > { %p1690_p9 = scmp.ne.s32.totalorder %s1951_s7, %s1689_s24  ;;  %p1698_p12 = scmp.lt.s32.totalorder %s1689_s24, %s1689_s24 }
  0x21   : > { %p1692_p10 = pnand %p1690_p9, %p1678_p13  ;;  %p1699_p0 = por %p1698_p12, %p1697_p1 }
  0x23   : > { %p1693_p6 = pneg %p1692_p10 }
  0x25   : > { %p1700_p4 = pnand %p1699_p0, %p1693_p6 }
  0x27   : > { %1703 = shalt.err (!%p1700_p4)
}
  0x28   : > { %s1852_s25 = smov 128   ;;  %s1853_s6 = smov 8  }
  0x29   : > { %1502 = dma.hbm_to_vmem [thread:$0]  (!%p1958_p11), %s2230_s1, 6144, %s1951_s7, [#allocation8], %s1852_s25, %s1852_s25, %s1853_s6  }
  0x2a   : > { %s1704_s14 = scalar_lea.hbm %s2232_s3, 3072 }
  0x2b   : > { %p1705_p1 = scmp.ne.s32.totalorder %s2232_s3, %s1704_s14  ;;  %p1711_p10 = scmp.lt.u32.totalorder %s1704_s14, %s2232_s3 }
  0x2d   : > { %p1707_p4 = pnand %p1705_p1, %p1678_p13 }
  0x2f   : > { %p1708_p6 = pneg %p1707_p4 }
  0x31   : > { %p1713_p3 = pnand %p1711_p10, %p1708_p6 }
  0x33   : > { %1716 = shalt.err (!%p1713_p3)
}
  0x34   : > { %s1717_s7 = scalar_lea.vmem %s1962_s10, 3072  ;;  %p1725_p12 = scmp.lt.s32.totalorder %s1962_s10, %s1962_s10 }
  0x35   : > { %p1718_p5 = scmp.ne.s32.totalorder %s1962_s10, %s1717_s7  ;;  %p1726_p0 = scmp.lt.s32.totalorder %s1717_s7, %s1717_s7 }
  0x37   : > { %p1720_p7 = pnand %p1718_p5, %p1678_p13  ;;  %p1727_p1 = por %p1726_p0, %p1725_p12 }
  0x39   : > { %p1721_p9 = pneg %p1720_p7 }
  0x3b   : > { %p1728_p4 = pnand %p1727_p1, %p1721_p9 }
  0x3d   : > { %1731 = shalt.err (!%p1728_p4)
}
  0x3e   : > { %s2238_s25 = smov 64   ;;  %s1855_s6 = smov 4  }
  0x3f   : > { %1505 = dma.hbm_to_vmem [thread:$0]  (!%p1958_p11), %s2232_s3, 3072, %s1962_s10, [#allocation8], %s2238_s25, %s2238_s25, %s1855_s6  }
  0x40   : > { %s34_s12 = sadd.s32 1, %s1844_s22  ;;  %s43_s13 = sadd.s32 1, %s1836_s20 }
  0x41   : > { %p36_p13 = scmp.ge.s32.totalorder %s34_s12, 2  ;;  %p50_p6 = scmp.ne.s32.totalorder %s1836_s20, %s1832_s19 }
  0x42   : > { %p51_p10 = scmp.eq.s32.totalorder %s1848_s23, 0  ;;  %p1516_p3 = scmp.lt.s32.totalorder %s1848_s23, 2 }
  0x43   : > { %s2260_s12 = smov (%p36_p13, %s34_s12), 0  ;;  %p2029_p7 = por %p1931_p2, %p50_p6 }
  0x44   : > { %p52_p5 = por %p51_p10, %p50_p6  ;;  %s38_s14 = ssub.s32 %s1844_s22, %s2260_s12 }
  0x45   : > { %s2246_s8 = scalar_select %p2029_p7, 1, 0 }
  0x46   : > { %s224_s15 = sand.u32 1, %s1836_s20   ;;  %p41_p9 = scmp.eq.s32.totalorder %s38_s14, 0 }
  0x47   : > { %s1280_s10 = sshll.u32 %s224_s15, 3  ;;  %s1369_s16 = sshll.u32 %s1844_s22, 7 }
  0x48   : > { %s2038_s17 = scalar_select %p41_p9, %s1836_s20, %s43_s13  }
  0x49   : > { %s2043_s9 = scalar_lea.hbm %s2229_s0, %s1369_s16  ;;  %s228_s27 = scalar_lea.vmem [#allocation4], %s1280_s10 }
  0x4a   : > { %s237_s11 = sshll.u32 %s228_s27, 4  ;;  %p2047_p2 = pnand %p1516_p3, %p52_p5  ;;  %s2051_s11 = int_to_ptr.vmem [resolvable:$true] %s237_s11 }
  0x4b   : > { %s2053_s13 = scalar_lea.sflag [#allocation5], %s224_s15  ;;  %s1732_s14 = scalar_lea.hbm %s2043_s9, 128 }
  0x4c   : > { %p1733_p11 = scmp.ne.s32.totalorder %s2043_s9, %s1732_s14  ;;  %p1734_p12 = pneg %p2047_p2 }
  0x4d   : > { %s1737_s24 = scalar_lea.hbm %s2229_s0, 256  ;;  %p1738_p4 = scmp.lt.u32.totalorder %s2043_s9, %s2229_s0 }
  0x4e   : > { %p1735_p0 = pnand %p1734_p12, %p1733_p11  ;;  %p1739_p13 = scmp.lt.u32.totalorder %s1737_s24, %s1732_s14 }
  0x4f   : > { %p1741_p10 = scmp.lt.u32.totalorder %s1732_s14, %s2043_s9 }
  0x50   : > { %p1736_p1 = pneg %p1735_p0  ;;  %p1740_p6 = por %p1739_p13, %p1738_p4 }
  0x52   : > { %p1742_p3 = por %p1741_p10, %p1740_p6 }
  0x54   : > { %p1743_p5 = pnand %p1742_p3, %p1736_p1 }
  0x56   : > { %1746 = shalt.err (!%p1743_p5)
}
  0x57   : > { %s1747_s15 = scalar_lea.vmem %s2051_s11, 128  ;;  %s1856_s10 = smov [#allocation4]  }
  0x58   : > { %p1748_p9 = scmp.ne.s32.totalorder %s2051_s11, %s1747_s15  ;;  %s1752_s16 = sshll.u32 %s1856_s10, 4  ;;  %s1753_s16 = int_to_ptr.vmem [resolvable:$false] %s1752_s16 }
  0x59   : > { %s1754_s7 = scalar_lea.vmem %s1753_s16, 256  ;;  %p1755_p7 = scmp.lt.s32.totalorder %s2051_s11, %s1753_s16 }
  0x5a   : > { %p1750_p11 = pnand %p1748_p9, %p1734_p12  ;;  %p1756_p4 = scmp.lt.s32.totalorder %s1754_s7, %s1747_s15 }
  0x5c   : > { %p1751_p0 = pneg %p1750_p11  ;;  %p1757_p13 = por %p1756_p4, %p1755_p7 }
  0x5e   : > { %p1758_p6 = pnand %p1757_p13, %p1751_p0 }
  0x60   : > { %1761 = shalt.err (!%p1758_p6)
}
  0x61   : > { %s2248_s14 = smov 64   ;;  %249 = sbr.rel (%p1947_p8) target bundleno = 740 (0x2e4), region = 40 }
  0x62   : > { %1509 = dma.hbm_to_vmem [thread:$0]  (!%p2047_p2), %s2043_s9, 128, %s2051_s11, %s2053_s13, %s2248_s14, %s2248_s14, %s1855_s6  }
  0x63   : > { %s2087_s24 = sand.u32 (!%p1947_p8), 1, %s1832_s19   ;;  %p2249_p7 = scmp.ne.s32.totalorder (!%p1947_p8), %s2242_s28, 0 }
  0x64   : > { %s1284_s27 = sshll.u32 (!%p1947_p8), %s2087_s24, 3  ;;  %s252_s15 = scalar_lea.sflag (!%p1947_p8), [#allocation5], %s2087_s24 }
  0x65   : > { %s255_s25 = scalar_lea.vmem (!%p1947_p8), [#allocation4], %s1284_s27 }
  0x68   : > { %1815 = dma.done.wait (%p2249_p7), %s252_s15, 128  }
  0x69   : > { %1817 = vsyncadd (%p2249_p7), %s252_s15, 4294967168  ;;  %p2250_p2 = scmp.ne.s32.totalorder %s2240_s26, 0 }
  0x6b   : > { %1819 = dma.done.wait (%p2250_p2), [#allocation8], 9216  }
  0x6c   : > { %1821 = vsyncadd (%p2250_p2), [#allocation8], 4294958080  ;;  %v1857_v0 = vmov 0   ;;  %v1858_v1 = vmov 0.0   ;;  %v1579_v2 = vld [vmem:[#allocation7 + $0x4] ss:$8 sps:$4 sm:$0xff]  }
  0x6d   : > { %297 = vst [vmem:[#allocation2] sm:$0xff] %v1857_v0  ;;  %298 = vst [vmem:[#allocation3] sm:$0xff] %v1857_v0  ;;  %457 = vmatprep.mubr.bf16.mxu0 %v1857_v0  ;;  %1405 = vmatprep.subr.bf16.mxu1 %v1858_v1  ;;  %v1581_v3 = vld [vmem:[#allocation7] ss:$8 sps:$4 sm:$0xff]   ;;  %v1582_v4 = vld [vmem:[#allocation7 + $0x14] ss:$8 sps:$4 sm:$0xff]  }
  0x6e   : > { %425 = vmatprep.subr.bf16.mxu0 %v1579_v2  ;;  %v1584_v5 = vld [vmem:[#allocation7 + $0x10] ss:$8 sps:$4 sm:$0xff]   ;;  %v1585_v6 = vld [vmem:[#allocation7 + $0x24] ss:$8 sps:$4 sm:$0xff]   ;;  %v1587_v7 = vld [vmem:[#allocation7 + $0x20] ss:$8 sps:$4 sm:$0xff]  }
  0x6f   : > { %426 = vmatpush1.bf16.msra.mxu0 %v1581_v3  ;;  %v1588_v8 = vld [vmem:[#allocation7 + $0x34] ss:$8 sps:$4 sm:$0xff]   ;;  %v1590_v9 = vld [vmem:[#allocation7 + $0x30] ss:$8 sps:$4 sm:$0xff]   ;;  %v1591_v10 = vld [vmem:[#allocation7 + $0x44] ss:$8 sps:$4 sm:$0xff]  }
  0x70   : > { %427 = vmatprep.subr.bf16.mxu0 %v1582_v4  ;;  %v2105_v11 = vld [vmem:[%s255_s25] sm:$0xff]   ;;  %v1593_v12 = vld [vmem:[#allocation7 + $0x40] ss:$8 sps:$4 sm:$0xff]   ;;  %v1597_v15 = vld [vmem:[#allocation7 + $0x64] ss:$8 sps:$4 sm:$0xff]   ;;  %vm340_vm0 = vcmask 1040384  }
  0x71   : > { %307 = vst [vmem:[#allocation2 + $0x8] sm:$0xff] %v2105_v11  ;;  %v1594_v13 = vld [vmem:[#allocation7 + $0x54] ss:$8 sps:$4 sm:$0xff]   ;;  %v1596_v14 = vld [vmem:[#allocation7 + $0x50] ss:$8 sps:$4 sm:$0xff]   ;;  %v1652_v28 = vld [vmem:[#allocation9] sm:$0xff]  }
  0x72   : > { %v1599_v16 = vld [vmem:[#allocation7 + $0x60] ss:$8 sps:$4 sm:$0xff]   ;;  %v1600_v17 = vld [vmem:[#allocation7 + $0x74] ss:$8 sps:$4 sm:$0xff]   ;;  %v1602_v20 = vld [vmem:[#allocation7 + $0x70] ss:$8 sps:$4 sm:$0xff]   ;;  %1406 = vmatpush3.bf16.msra.mxu1 %v1652_v28 }
  0x73   : > { %428 = vmatpush1.bf16.msra.mxu0 %v1584_v5  ;;  %v1605_v23 = vld [vmem:[#allocation7 + $0x84] ss:$8 sps:$4 sm:$0xff]   ;;  %v1603_v24 = vld [vmem:[#allocation7 + $0x80] ss:$8 sps:$4 sm:$0xff]   ;;  %v1609_v26 = vld [vmem:[#allocation7 + $0x94] ss:$8 sps:$4 sm:$0xff]   ;;  %1407 = vmatprep.subr.bf16.mxu1 %v1858_v1 }
  0x74   : > { %429 = vmatprep.subr.bf16.mxu0 %v1585_v6  ;;  %v320_v18 = vld [vmem:[#allocation2] sm:$0x80]  ;;  %v1607_v27 = vld [vmem:[#allocation7 + $0x90] ss:$8 sps:$4 sm:$0xff]   ;;  %v1612_v29 = vld [vmem:[#allocation7 + $0xa4] ss:$8 sps:$4 sm:$0xff]  }
  0x75   : > { %v341_v21 = vrot.slane %v320_v18, 7  ;;  %v1653_v30 = vld [vmem:[#allocation9 + $0x8] sm:$0xff]   ;;  %v1615_v32 = vld [vmem:[#allocation7 + $0xb4] ss:$8 sps:$4 sm:$0xff]   ;;  %v1613_v34 = vld [vmem:[#allocation7 + $0xb0] ss:$8 sps:$4 sm:$0xff]  }
  0x76   : > { %v1610_v31 = vld [vmem:[#allocation7 + $0xa0] ss:$8 sps:$4 sm:$0xff]   ;;  %v1654_v33 = vld [vmem:[#allocation9 + $0x10] sm:$0xff]   ;;  %1408 = vmatpush3.bf16.msra.mxu1 %v1653_v30  ;;  %v1618_v35 = vld [vmem:[#allocation7 + $0xc4] ss:$8 sps:$4 sm:$0xff]   ;;  %v495_v39 = vshrl.u32 %v2105_v11, 16 }
  0x77   : > { %430 = vmatpush1.bf16.msra.mxu0 %v1587_v7  ;;  %1409 = vmatprep.subr.bf16.mxu1 %v1858_v1  ;;  %v1616_v36 = vld [vmem:[#allocation7 + $0xc0] ss:$8 sps:$4 sm:$0xff]   ;;  %v1621_v37 = vld [vmem:[#allocation7 + $0xd4] ss:$8 sps:$4 sm:$0xff]   ;;  %v1619_v38 = vld [vmem:[#allocation7 + $0xd0] ss:$8 sps:$4 sm:$0xff]  }
  0x78   : > { %431 = vmatprep.subr.bf16.mxu0 %v1588_v8  ;;  %v321_v19 = vld [vmem:[#allocation2 + $0x8] sm:$0x7f]  ;;  %v1624_v40 = vld [vmem:[#allocation7 + $0xe4] ss:$8 sps:$4 sm:$0xff]   ;;  %v491_v41 = vshrl.u32 %v320_v18, 16  ;;  %v497_v43 = vrot.slane %v495_v39, 7  ;;  %v310_v8 = vlaneseq }
  0x79   : > { %v342_v22 = vrot.slane %v321_v19, 7  ;;  %v1622_v42 = vld [vmem:[#allocation7 + $0xe0] ss:$8 sps:$4 sm:$0xff]   ;;  %v498_v44 = vshll.u32 %v2105_v11, 16  ;;  %v1627_v45 = vld [vmem:[#allocation7 + $0xf4] ss:$8 sps:$4 sm:$0xff]  }
  0x7a   : > { %1410 = vmatpush3.bf16.msra.mxu1 %v1654_v33  ;;  %v1625_v46 = vld [vmem:[#allocation7 + $0xf0] ss:$8 sps:$4 sm:$0xff]   ;;  %v493_v47 = vrot.slane %v491_v41, 7  ;;  %v1630_v49 = vld [vmem:[#allocation7 + $0x104] ss:$8 sps:$4 sm:$0xff]   ;;  %vm1859_vm2 = vmmov 0  }
  0x7b   : > { %432 = vmatpush1.bf16.msra.mxu0 %v1590_v9  ;;  %v343_v25 = vsel %vm340_vm0, %v341_v21, %v342_v22  ;;  %1411 = vmatprep.subr.bf16.mxu1 %v1858_v1  ;;  %v500_v48 = vor.u32 %v498_v44, %v497_v43  ;;  %vm489_vm1 = vsmask.f32 256  ;;  %v1628_v50 = vld [vmem:[#allocation7 + $0x100] ss:$8 sps:$4 sm:$0xff]   ;;  %v1633_v52 = vld [vmem:[#allocation7 + $0x114] ss:$8 sps:$4 sm:$0xff]  }
  0x7c   : > { %433 = vmatprep.subr.bf16.mxu0 %v1591_v10  ;;  %v1631_v53 = vld [vmem:[#allocation7 + $0x110] ss:$8 sps:$4 sm:$0xff]   ;;  %v1636_v54 = vld [vmem:[#allocation7 + $0x124] ss:$8 sps:$4 sm:$0xff]   ;;  %v1634_v55 = vld [vmem:[#allocation7 + $0x120] ss:$8 sps:$4 sm:$0xff]   ;;  %1421 = vmatprep.mubr.msk.bf16.mxu1 %vm1859_vm2, %v1858_v1 }
  0x7d   : > { %v501_v51 = vsel %vm489_vm1, %v493_v47, %v500_v48  ;;  %v1639_v56 = vld [vmem:[#allocation7 + $0x134] ss:$8 sps:$4 sm:$0xff]   ;;  %v1637_v57 = vld [vmem:[#allocation7 + $0x130] ss:$8 sps:$4 sm:$0xff]   ;;  %v1642_v58 = vld [vmem:[#allocation7 + $0x144] ss:$8 sps:$4 sm:$0xff]  }
  0x7e   : > { %v1640_v59 = vld [vmem:[#allocation7 + $0x140] ss:$8 sps:$4 sm:$0xff]   ;;  %v1645_v60 = vld [vmem:[#allocation7 + $0x154] ss:$8 sps:$4 sm:$0xff]   ;;  %v1643_v61 = vld [vmem:[#allocation7 + $0x150] ss:$8 sps:$4 sm:$0xff]  }
  0x7f   : > { %434 = vmatpush1.bf16.msra.mxu0 %v1593_v12  ;;  %v1648_v62 = vld [vmem:[#allocation7 + $0x164] ss:$8 sps:$4 sm:$0xff]   ;;  %v1646_v63 = vld [vmem:[#allocation7 + $0x160] ss:$8 sps:$4 sm:$0xff]   ;;  %v1649_v2 = vld [vmem:[#allocation7 + $0x170] ss:$8 sps:$4 sm:$0xff]  }
  0x80   : > { %435 = vmatprep.subr.bf16.mxu0 %v1594_v13  ;;  %v1655_v3 = vld [vmem:[#allocation9 + $0x18] sm:$0xff]   ;;  %v1656_v4 = vld [vmem:[#allocation9 + $0x20] sm:$0xff]   ;;  %v1657_v5 = vld [vmem:[#allocation9 + $0x28] sm:$0xff]   ;;  %v2125_v9 = vshrl.u32 %v310_v8, 7  ;;  %s1372_s9 = sshll.u32 %s1840_s21, 7  ;;  %s289_s11 = scalar_lea.vmem [#allocation10], %s1284_s27 }
  0x81   : > { %1412 = vmatpush3.bf16.msra.mxu1 %v1655_v3  ;;  %v1658_v6 = vld [vmem:[#allocation9 + $0x30] sm:$0xff]   ;;  %v1659_v7 = vld [vmem:[#allocation9 + $0x38] sm:$0xff]   ;;  %v784_v22 = vld [vmem:[#allocation3] sm:$0x80]  ;;  %s1168_s13 = sshll.u32 %s289_s11, 4  ;;  %s2178_s7 = scalar_lea.hbm %s2234_s5, %s1372_s9  ;;  %s2180_s13 = int_to_ptr.vmem [resolvable:$true] %s1168_s13 }
  0x82   : > { %1413 = vmatprep.subr.bf16.mxu1 %v1858_v1  ;;  %v312_v10 = vsub.s32 0, %v2125_v9  ;;  %v1661_v28 = vld [vmem:[#allocation9 + $0x48] sm:$0xff]   ;;  %v1663_v30 = vld [vmem:[#allocation9 + $0x58] sm:$0xff]   ;;  %v1668_v41 = vld [vmem:[#allocation9 + $0x80] sm:$0xff]   ;;  %s1153_s14 = scalar_lea.sflag [#allocation6], %s2087_s24  ;;  %s1762_s15 = scalar_lea.vmem %s2180_s13, 128 }
  0x83   : > { %436 = vmatpush1.bf16.msra.mxu0 %v1596_v14  ;;  %v1669_v43 = vld [vmem:[#allocation9 + $0x88] sm:$0xff]   ;;  %v1670_v44 = vld [vmem:[#allocation9 + $0x90] sm:$0xff]   ;;  %p1763_p8 = scmp.ne.s32.totalorder %s2180_s13, %s1762_s15  ;;  %p2251_p12 = scmp.ne.s32.totalorder %s2246_s8, 0 }
  0x84   : > { %437 = vmatprep.subr.bf16.mxu0 %v1597_v15  ;;  %v1673_v47 = vld [vmem:[#allocation9 + $0xa8] sm:$0xff]   ;;  %v1674_v48 = vld [vmem:[#allocation9 + $0xb0] sm:$0xff]   ;;  %s1860_s21 = smov [#allocation10]  }
  0x85   : > { %1414 = vmatpush3.bf16.msra.mxu1 %v1656_v4  ;;  %p1764_p1 = pnand %p1763_p8, %p2251_p12  ;;  %s1766_s27 = sshll.u32 %s1860_s21, 4  ;;  %s1767_s27 = int_to_ptr.vmem [resolvable:$false] %s1766_s27 }
  0x86   : > { %1415 = vmatprep.subr.bf16.mxu1 %v1858_v1  ;;  %s1768_s25 = scalar_lea.vmem %s1767_s27, 256  ;;  %p1769_p3 = scmp.lt.s32.totalorder %s2180_s13, %s1767_s27 }
  0x87   : > { %438 = vmatpush1.bf16.msra.mxu0 %v1599_v16  ;;  %p1765_p10 = pneg %p1764_p1  ;;  %p1770_p5 = scmp.lt.s32.totalorder %s1768_s25, %s1762_s15 }
  0x88   : > { %439 = vmatprep.subr.bf16.mxu0 %v1600_v17 }
  0x89   : > { %1416 = vmatpush3.bf16.msra.mxu1 %v1657_v5  ;;  %p1771_p9 = por %p1770_p5, %p1769_p3 }
  0x8a   : > { %1417 = vmatprep.subr.bf16.mxu1 %v1858_v1 }
  0x8b   : > { %440 = vmatpush1.bf16.msra.mxu0 %v1602_v20  ;;  %p1772_p11 = pnand %p1771_p9, %p1765_p10 }
  0x8c   : > { %583 = vmatprep.subr.bf16.mxu0 %v1605_v23  ;;  %v804_v23 = vrot.slane %v784_v22, 7 }
  0x8d   : > { %1418 = vmatpush3.bf16.msra.mxu1 %v1658_v6 }
  0x8e   : > { %458 = vmatmul.mubr.bf16.vlgmr.msra.gmra.mrb[0].mxu0 %v343_v25  ;;  %1419 = vmatprep.subr.bf16.mxu1 %v1858_v1 }
  0x8f   : > { %584 = vmatpush1.bf16.msra.mxu0 %v1603_v24  ;;  %615 = vmatprep.mubr.bf16.mxu0 %v1857_v0 }
  0x90   : > { %585 = vmatprep.subr.bf16.mxu0 %v1609_v26  ;;  %v1660_v26 = vld [vmem:[#allocation9 + $0x40] sm:$0xff]  }
  0x91   : > { %1420 = vmatpush3.bf16.msra.mxu1 %v1659_v7 }
  0x92   : > { %1425 = vmatprep.subr.bf16.mxu1 %v1858_v1 }
  0x93   : > { %586 = vmatpush1.bf16.msra.mxu0 %v1607_v27 }
  0x94   : > { %587 = vmatprep.subr.bf16.mxu0 %v1612_v29  ;;  %v1662_v29 = vld [vmem:[#allocation9 + $0x50] sm:$0xff]  }
  0x97   : > { %588 = vmatpush1.bf16.msra.mxu0 %v1610_v31  ;;  %v1664_v31 = vld [vmem:[#allocation9 + $0x60] sm:$0xff]  }
  0x98   : > { %589 = vmatprep.subr.bf16.mxu0 %v1615_v32  ;;  %v1665_v32 = vld [vmem:[#allocation9 + $0x68] sm:$0xff]  }
  0x9b   : > { %590 = vmatpush1.bf16.msra.mxu0 %v1613_v34  ;;  %v1666_v34 = vld [vmem:[#allocation9 + $0x70] sm:$0xff]  }
  0x9c   : > { %591 = vmatprep.subr.bf16.mxu0 %v1618_v35  ;;  %v917_v35 = vshrl.u32 %v784_v22, 16 }
  0x9e   : > { %v919_v39 = vrot.slane %v917_v35, 7 }
  0x9f   : > { %592 = vmatpush1.bf16.msra.mxu0 %v1616_v36 }
  0xa0   : > { %593 = vmatprep.subr.bf16.mxu0 %v1621_v37  ;;  %v1667_v37 = vld [vmem:[#allocation9 + $0x78] sm:$0xff]  }
  0xa3   : > { %594 = vmatpush1.bf16.msra.mxu0 %v1619_v38 }
  0xa4   : > { %595 = vmatprep.subr.bf16.mxu0 %v1624_v40 }
  0xa7   : > { %596 = vmatpush1.bf16.msra.mxu0 %v1622_v42 }
  0xa8   : > { %597 = vmatprep.subr.bf16.mxu0 %v1627_v45  ;;  %v1671_v45 = vld [vmem:[#allocation9 + $0x98] sm:$0xff]  }
  0xab   : > { %598 = vmatpush1.bf16.msra.mxu0 %v1625_v46  ;;  %v1672_v46 = vld [vmem:[#allocation9 + $0xa0] sm:$0xff]  }
  0xac   : > { %726 = vmatprep.subr.bf16.mxu0 %v1630_v49  ;;  %v1675_v49 = vld [vmem:[#allocation9 + $0xb8] sm:$0xff]  }
  0xae   : > { %616 = vmatmul.mubr.bf16.vlgmr.msra.gmra.mrb[0].mxu0 %v501_v51  ;;  %v1337_v51 = vld [vmem:[%s2233_s4] ss:$0 sm:$0xff] }
  0xaf   : > { %727 = vmatpush1.bf16.msra.mxu0 %v1628_v50  ;;  %758 = vmatprep.mubr.bf16.mxu0 %v1857_v0  ;;  %v1651_v0 = vld [vmem:[#allocation7 + $0x174] ss:$8 sps:$4 sm:$0xff]   ;;  %v316_v50 = vsub.s32 1, %v2125_v9 }
  0xb0   : > { %728 = vmatprep.subr.bf16.mxu0 %v1633_v52 }
  0xb3   : > { %729 = vmatpush1.bf16.msra.mxu0 %v1631_v53 }
  0xb4   : > { %730 = vmatprep.subr.bf16.mxu0 %v1636_v54 }
  0xb7   : > { %731 = vmatpush1.bf16.msra.mxu0 %v1634_v55 }
  0xb8   : > { %732 = vmatprep.subr.bf16.mxu0 %v1639_v56 }
  0xbb   : > { %733 = vmatpush1.bf16.msra.mxu0 %v1637_v57 }
  0xbc   : > { %734 = vmatprep.subr.bf16.mxu0 %v1642_v58 }
  0xbf   : > { %735 = vmatpush1.bf16.msra.mxu0 %v1640_v59 }
  0xc0   : > { %736 = vmatprep.subr.bf16.mxu0 %v1645_v60 }
  0xc3   : > { %737 = vmatpush1.bf16.msra.mxu0 %v1643_v61 }
  0xc4   : > { %738 = vmatprep.subr.bf16.mxu0 %v1648_v62 }
  0xc7   : > { %739 = vmatpush1.bf16.msra.mxu0 %v1646_v63 }
  0xc8   : > { %740 = vmatprep.subr.bf16.mxu0 %v1651_v0 }
  0xcb   : > { %741 = vmatpush1.bf16.msra.mxu0 %v1649_v2 }
  0xce   : > { %759 = vmatmul.mubr.bf16.vlgmr.msra.gmra.mrb[0].mxu0 %v2105_v11  ;;  %v2131_v11 = vld [vmem:[%s2231_s2] sm:$0x3] }
  0xcf   : > { %v313_v12 = vrot.slane %v2131_v11, %v312_v10  ;;  %v317_v52 = vrot.slane %v2131_v11, %v316_v50 }
 0x1a1   : > { %v760_v13 = vpop.f32.mrb[0].mxu0 }
 0x1a2   : > { %v1465_v14 = vadd.f32 %v760_v13, %v313_v12  ;;  %v2134_v15 = vpop.f32.mrb[1].mxu0 }
 0x1a3   : > { %v764_v16 = vpop.f32.mrb[2].mxu0  ;;  %v1466_v57 = vadd.f32 %v2134_v15, %v317_v52 }
 0x1a4   : > { %v1467_v17 = vadd.f32 %v764_v16, %v313_v12  ;;  %v2136_v18 = vpop.f32.mrb[3].mxu0  ;;  %v773_v19 = vmax.f32 %v1465_v14, 0.0 }
 0x1a5   : > { %v1468_v60 = vadd.f32 %v2136_v18, %v317_v52 }
 0x1a6   : > { %v774_v20 = vmax.f32 %v1467_v17, 0.0 }
 0x1a8   : > { %v2138_v21 = vpack.c.bf16 %v774_v20, %v773_v19 }
 0x1aa   : > { %776 = vst [vmem:[#allocation3 + $0x8] sm:$0xff] %v2138_v21  ;;  %v921_v33 = vshrl.u32 %v2138_v21, 16  ;;  %v924_v38 = vshll.u32 %v2138_v21, 16 }
 0x1ac   : > { %v923_v36 = vrot.slane %v921_v33, 7 }
 0x1ae   : > { %v926_v40 = vor.u32 %v924_v38, %v923_v36 }
 0x1b0   : > { %v927_v42 = vsel %vm489_vm1, %v919_v39, %v926_v40 }
 0x1b1   : > { %v785_v24 = vld [vmem:[#allocation3 + $0x8] sm:$0x7f] }
 0x1b2   : > { %v805_v25 = vrot.slane %v785_v24, 7 }
 0x1b4   : > { %v806_v27 = vsel %vm340_vm0, %v804_v23, %v805_v25 }
 0x1b5   : > { %1422 = vmatmul.mubr.bf16.vlgmr.msra.gmra.mrb[0].mxu1 %v806_v27 }
 0x1b6   : > { %1426 = vmatpush3.bf16.msra.mxu1 %v1660_v26  ;;  %1441 = vmatprep.mubr.msk.bf16.mxu1 %vm1859_vm2, %v1858_v1 }
 0x1b7   : > { %1427 = vmatprep.subr.bf16.mxu1 %v1858_v1 }
 0x1ba   : > { %1428 = vmatpush3.bf16.msra.mxu1 %v1661_v28 }
 0x1bb   : > { %1429 = vmatprep.subr.bf16.mxu1 %v1858_v1 }
 0x1be   : > { %1430 = vmatpush3.bf16.msra.mxu1 %v1662_v29 }
 0x1bf   : > { %1431 = vmatprep.subr.bf16.mxu1 %v1858_v1 }
 0x1c2   : > { %1432 = vmatpush3.bf16.msra.mxu1 %v1663_v30 }
 0x1c3   : > { %1433 = vmatprep.subr.bf16.mxu1 %v1858_v1 }
 0x1c6   : > { %1434 = vmatpush3.bf16.msra.mxu1 %v1664_v31 }
 0x1c7   : > { %1435 = vmatprep.subr.bf16.mxu1 %v1858_v1 }
 0x1ca   : > { %1436 = vmatpush3.bf16.msra.mxu1 %v1665_v32 }
 0x1cb   : > { %1437 = vmatprep.subr.bf16.mxu1 %v1858_v1 }
 0x1ce   : > { %1438 = vmatpush3.bf16.msra.mxu1 %v1666_v34 }
 0x1cf   : > { %1439 = vmatprep.subr.bf16.mxu1 %v1858_v1 }
 0x1d2   : > { %1440 = vmatpush3.bf16.msra.mxu1 %v1667_v37 }
 0x1d3   : > { %1445 = vmatprep.subr.bf16.mxu1 %v1858_v1 }
 0x1d5   : > { %1442 = vmatmul.mubr.bf16.vlgmr.msra.gmra.mrb[0].mxu1 %v927_v42 }
 0x1d6   : > { %1446 = vmatpush3.bf16.msra.mxu1 %v1668_v41  ;;  %1461 = vmatprep.mubr.msk.bf16.mxu1 %vm1859_vm2, %v1858_v1 }
 0x1d7   : > { %1447 = vmatprep.subr.bf16.mxu1 %v1858_v1 }
 0x1da   : > { %1448 = vmatpush3.bf16.msra.mxu1 %v1669_v43 }
 0x1db   : > { %1449 = vmatprep.subr.bf16.mxu1 %v1858_v1 }
 0x1de   : > { %1450 = vmatpush3.bf16.msra.mxu1 %v1670_v44 }
 0x1df   : > { %1451 = vmatprep.subr.bf16.mxu1 %v1858_v1 }
 0x1e2   : > { %1452 = vmatpush3.bf16.msra.mxu1 %v1671_v45 }
 0x1e3   : > { %1453 = vmatprep.subr.bf16.mxu1 %v1858_v1 }
 0x1e6   : > { %1454 = vmatpush3.bf16.msra.mxu1 %v1672_v46 }
 0x1e7   : > { %1455 = vmatprep.subr.bf16.mxu1 %v1858_v1 }
 0x1ea   : > { %1456 = vmatpush3.bf16.msra.mxu1 %v1673_v47 }
 0x1eb   : > { %1457 = vmatprep.subr.bf16.mxu1 %v1858_v1 }
 0x1ee   : > { %1458 = vmatpush3.bf16.msra.mxu1 %v1674_v48 }
 0x1ef   : > { %1459 = vmatprep.subr.bf16.mxu1 %v1858_v1 }
 0x1f2   : > { %1460 = vmatpush3.bf16.msra.mxu1 %v1675_v49 }
 0x1f5   : > { %1462 = vmatmul.mubr.bf16.vlgmr.msra.gmra.mrb[0].mxu1 %v2138_v21 }
 0x2c8   : > { %v1118_v53 = vpop.f32.mrb[0].mxu1 }
 0x2c9   : > { %v1469_v54 = vadd.f32 %v1337_v51, %v1118_v53  ;;  %v1463_v55 = vpop.f32.mrb[1].mxu1 }
 0x2ca   : > { %v1121_v56 = vpop.f32.mrb[2].mxu1 }
 0x2cb   : > { %v1127_v1 = vmax.f32 %v1469_v54, 0.0  ;;  %v1470_v58 = vadd.f32 %v1337_v51, %v1121_v56  ;;  %v1464_v59 = vpop.f32.mrb[3].mxu1 }
 0x2cd   : > { %v1129_v61 = vadd.f32 %v1466_v57, %v1127_v1  ;;  %v1128_v62 = vmax.f32 %v1470_v58, 0.0 }
 0x2cf   : > { %v1130_v63 = vadd.f32 %v1468_v60, %v1128_v62  ;;  %v1131_v0 = vmax.f32 %v1129_v61, 0.0 }
 0x2d1   : > { %v1132_v2 = vmax.f32 %v1130_v63, 0.0 }
 0x2d3   : > { %v1376_v3 = vpack.c.bf16 %v1132_v2, %v1131_v0 }
 0x2d5   : > { %1377 = vst [vmem:[%s289_s11] sm:$0xff] %v1376_v3  }
 0x2d6   : > { %1775 = shalt.err (!%p1772_p11)
}
 0x2d7   : > { %s1776_s26 = scalar_lea.hbm %s2178_s7, 128  ;;  %s1780_s6 = scalar_lea.hbm %s2234_s5, 256 }
 0x2d8   : > { %p1777_p0 = scmp.ne.s32.totalorder %s2178_s7, %s1776_s26  ;;  %p1781_p6 = scmp.lt.u32.totalorder %s2178_s7, %s2234_s5 }
 0x2d9   : > { %p1782_p7 = scmp.lt.u32.totalorder %s1780_s6, %s1776_s26  ;;  %p1784_p8 = scmp.lt.u32.totalorder %s1776_s26, %s2178_s7 }
 0x2da   : > { %p1778_p4 = pnand %p1777_p0, %p2251_p12 }
 0x2db   : > { %p1783_p2 = por %p1782_p7, %p1781_p6 }
 0x2dc   : > { %p1779_p13 = pneg %p1778_p4 }
 0x2dd   : > { %p1785_p1 = por %p1784_p8, %p1783_p2 }
 0x2df   : > { %p1786_p10 = pnand %p1785_p1, %p1779_p13 }
 0x2e1   : > { %1789 = shalt.err (!%p1786_p10)
}
 0x2e2   : > { %s1861_s10 = smov 64   ;;  %s1862_s16 = smov 4  }
 0x2e3   : > { %1497 = dma.vmem_to_hbm [thread:$0]  (%p2251_p12), %s2180_s13, 128, %s2178_s7, %s1153_s14, %s1861_s10, %s1861_s10, %s1862_s16  }
 0x2e4 PF: > { %s1183_s15 = sand.u32 1, %s1828_s18   ;;  %p2252_p3 = scmp.ne.s32.totalorder %s2243_s29, 0 }
 0x2e5   : > { %p2253_p5 = scmp.ge.s32.totalorder %s1848_s23, 2  ;;  %s1184_s21 = scalar_lea.sflag [#allocation6], %s1183_s15 }
 0x2e7   : > { %p1511_p9 = pnand %p2253_p5, %p2252_p3 }
 0x2e9   : > { %1823 = dma.done.wait (!%p1511_p9), %s1184_s21, 128  }
 0x2ea   : > { %1825 = vsyncadd (!%p1511_p9), %s1184_s21, 4294967168  ;;  %s22_s23 = sadd.s32 1, %s1848_s23   ;;  %s2254_s18 = smov %s1832_s19 }
 0x2eb   : > { %p19_p11 = scmp.ge.s32.totalorder %s22_s23, 4   ;;  %s2255_s19 = smov %s1836_s20 }
 0x2ec   : > { %s2256_s20 = smov %s2038_s17  ;;  %s2257_s21 = smov %s1844_s22 }
 0x2ed   : > { %s2258_s22 = smov %s2260_s12  ;;  %21 = sbr.rel (!%p19_p11) target bundleno = 7 (0x7), region = 101 }
 0x2f4   :  { %1189 = vsyncpa [#allocation5], 1 }
 0x2f5   :  { %1191 = vsyncpa [#allocation5 + $0x1], 1 }
 0x2f6   :  { %1192 = vsyncpa [#allocation8], 1 }
 0x2f7   :  { %1193 = vsyncpa [#allocation6], 1 }
 0x2f8   :  { %1195 = vsyncpa [#allocation6 + $0x1], 1 }

// kernel: tpu_custom_call.1
= control target key start
LH: loop header
LB: loop body
LE: loop exit
PB: predicated region body
PF: predicated region fallthrough
CT: control target
= control target key end

     0   :  { %10 = vsyncpa [#allocation5], 0  ;;  %s2229_s0 = inlined_call_operand.hbm [shape: bf16[2,16,128], index: 0, kind: input, shape index: {}]   ;;  %s2230_s1 = inlined_call_operand.hbm [shape: bf16[384,256], index: 1, kind: input, shape index: {}]   ;;  %s2231_s2 = inlined_call_operand.vmem [shape: f32[1,256], index: 2, kind: input, shape index: {}]   ;;  %s2232_s3 = inlined_call_operand.hbm [shape: bf16[384,128], index: 3, kind: input, shape index: {}]   ;;  %s2233_s4 = inlined_call_operand.vmem [shape: f32[1,128], index: 4, kind: input, shape index: {}]   ;;  %s2234_s5 = inlined_call_operand.hbm [shape: bf16[2,16,128], index: 5, kind: output, shape index: {}]  }
   0x1   :  { %12 = vsyncpa [#allocation5 + $0x1], 0 }
   0x2   :  { %13 = vsyncpa [#allocation8], 0 }
   0x3   :  { %14 = vsyncpa [#allocation6], 0 }
   0x4   :  { %16 = vsyncpa [#allocation6 + $0x1], 0  ;;  %s1893_s18 = smov 0   ;;  %s1895_s19 = smov 0  }
   0x5   :  { %s1897_s20 = smov 0   ;;  %s1899_s21 = smov 0  }
   0x6   :  { %s1901_s22 = smov 0   ;;  %s1903_s23 = smov 0  }
   0x7 LB: > { %s1274_s24 = sadd.s32 4294967295, %s1848_s23   ;;  %s1275_s25 = sadd.s32 4294967294, %s1848_s23   ;;  %s1848_s23 = sphi %s1903_s23, %s22_s23   ;;  %s1844_s22 = sphi %s1901_s22, %s2258_s22   ;;  %s1840_s21 = sphi %s1899_s21, %s2257_s21   ;;  %s1836_s20 = sphi %s1897_s20, %s2256_s20   ;;  %s1832_s19 = sphi %s1895_s19, %s2255_s19   ;;  %s1828_s18 = sphi %s1893_s18, %s2254_s18  }
   0x8   : > { %p56_p0 = scmp.ne.s32.totalorder %s1832_s19, %s1828_s18  ;;  %p1927_p1 = scmp.eq.s32.totalorder %s1274_s24, 0 }
   0x9   : > { %p1931_p2 = scmp.eq.s32.totalorder %s1274_s24, 1  ;;  %p172_p3 = scmp.eq.s32.totalorder %s1275_s25, 1 }
   0xa   : > { %s2240_s26 = scalar_select %p1927_p1, 1, 0 }
   0xb   : > { %p1937_p4 = por %p1927_p1, %p56_p0  ;;  %p1276_p5 = scmp.ge.s32.totalorder %s1848_s23, 1 }
   0xc   : > { %p1942_p6 = por %p172_p3, %p56_p0  ;;  %p179_p7 = scmp.lt.s32.totalorder %s1848_s23, 3 }
   0xd   : > { %s2242_s28 = scalar_select %p1937_p4, 1, 0 }
   0xe   : > { %s2243_s29 = scalar_select %p1942_p6, 1, 0 }
   0xf   : > { %p1947_p8 = pnand %p1276_p5, %p179_p7  ;;  %s1850_s6 = smov [#allocation7]  }
  0x10   : > { %s191_s7 = sshll.u32 %s1850_s6, 4  ;;  %s1851_s9 = smov [#allocation9]   ;;  %s1951_s7 = int_to_ptr.vmem [resolvable:$true] %s191_s7 }
  0x11   : > { %p1499_p9 = pneg %p1947_p8  ;;  %s207_s10 = sshll.u32 %s1851_s9, 4  ;;  %s1962_s10 = int_to_ptr.vmem [resolvable:$true] %s207_s10 }
  0x12   : > { %s1676_s13 = scalar_lea.hbm %s2230_s1, 6144 }
  0x13   : > { %p1958_p11 = pnand %p1499_p9, %p1927_p1  ;;  %p1677_p12 = scmp.ne.s32.totalorder %s2230_s1, %s1676_s13 }
  0x14   : > { %p1683_p5 = scmp.lt.u32.totalorder %s1676_s13, %s2230_s1 }
  0x15   : > { %p1678_p13 = pneg %p1958_p11 }
  0x17   : > { %p1679_p0 = pnand %p1678_p13, %p1677_p12 }
  0x19   : > { %p1680_p3 = pneg %p1679_p0 }
  0x1b   : > { %p1685_p7 = pnand %p1683_p5, %p1680_p3 }
  0x1d   : > { %1688 = shalt.err (!%p1685_p7)
}
  0x1e   : > { %s1689_s24 = scalar_lea.vmem %s1951_s7, 6144  ;;  %p1697_p1 = scmp.lt.s32.totalorder %s1951_s7, %s1951_s7 }
  0x1f   : > { %p1690_p9 = scmp.ne.s32.totalorder %s1951_s7, %s1689_s24  ;;  %p1698_p12 = scmp.lt.s32.totalorder %s1689_s24, %s1689_s24 }
  0x21   : > { %p1692_p10 = pnand %p1690_p9, %p1678_p13  ;;  %p1699_p0 = por %p1698_p12, %p1697_p1 }
  0x23   : > { %p1693_p6 = pneg %p1692_p10 }
  0x25   : > { %p1700_p4 = pnand %p1699_p0, %p1693_p6 }
  0x27   : > { %1703 = shalt.err (!%p1700_p4)
}
  0x28   : > { %s1852_s25 = smov 128   ;;  %s1853_s6 = smov 8  }
  0x29   : > { %1502 = dma.hbm_to_vmem [thread:$0]  (!%p1958_p11), %s2230_s1, 6144, %s1951_s7, [#allocation8], %s1852_s25, %s1852_s25, %s1853_s6  }
  0x2a   : > { %s1704_s14 = scalar_lea.hbm %s2232_s3, 3072 }
  0x2b   : > { %p1705_p1 = scmp.ne.s32.totalorder %s2232_s3, %s1704_s14  ;;  %p1711_p10 = scmp.lt.u32.totalorder %s1704_s14, %s2232_s3 }
  0x2d   : > { %p1707_p4 = pnand %p1705_p1, %p1678_p13 }
  0x2f   : > { %p1708_p6 = pneg %p1707_p4 }
  0x31   : > { %p1713_p3 = pnand %p1711_p10, %p1708_p6 }
  0x33   : > { %1716 = shalt.err (!%p1713_p3)
}
  0x34   : > { %s1717_s7 = scalar_lea.vmem %s1962_s10, 3072  ;;  %p1725_p12 = scmp.lt.s32.totalorder %s1962_s10, %s1962_s10 }
  0x35   : > { %p1718_p5 = scmp.ne.s32.totalorder %s1962_s10, %s1717_s7  ;;  %p1726_p0 = scmp.lt.s32.totalorder %s1717_s7, %s1717_s7 }
  0x37   : > { %p1720_p7 = pnand %p1718_p5, %p1678_p13  ;;  %p1727_p1 = por %p1726_p0, %p1725_p12 }
  0x39   : > { %p1721_p9 = pneg %p1720_p7 }
  0x3b   : > { %p1728_p4 = pnand %p1727_p1, %p1721_p9 }
  0x3d   : > { %1731 = shalt.err (!%p1728_p4)
}
  0x3e   : > { %s2238_s25 = smov 64   ;;  %s1855_s6 = smov 4  }
  0x3f   : > { %1505 = dma.hbm_to_vmem [thread:$0]  (!%p1958_p11), %s2232_s3, 3072, %s1962_s10, [#allocation8], %s2238_s25, %s2238_s25, %s1855_s6  }
  0x40   : > { %s34_s12 = sadd.s32 1, %s1844_s22  ;;  %s43_s13 = sadd.s32 1, %s1836_s20 }
  0x41   : > { %p36_p13 = scmp.ge.s32.totalorder %s34_s12, 2  ;;  %p50_p6 = scmp.ne.s32.totalorder %s1836_s20, %s1832_s19 }
  0x42   : > { %p51_p10 = scmp.eq.s32.totalorder %s1848_s23, 0  ;;  %p1516_p3 = scmp.lt.s32.totalorder %s1848_s23, 2 }
  0x43   : > { %s2260_s12 = smov (%p36_p13, %s34_s12), 0  ;;  %p2029_p7 = por %p1931_p2, %p50_p6 }
  0x44   : > { %p52_p5 = por %p51_p10, %p50_p6  ;;  %s38_s14 = ssub.s32 %s1844_s22, %s2260_s12 }
  0x45   : > { %s2246_s8 = scalar_select %p2029_p7, 1, 0 }
  0x46   : > { %s224_s15 = sand.u32 1, %s1836_s20   ;;  %p41_p9 = scmp.eq.s32.totalorder %s38_s14, 0 }
  0x47   : > { %s1280_s10 = sshll.u32 %s224_s15, 3  ;;  %s1369_s16 = sshll.u32 %s1844_s22, 7 }
  0x48   : > { %s2038_s17 = scalar_select %p41_p9, %s1836_s20, %s43_s13  }
  0x49   : > { %s2043_s9 = scalar_lea.hbm %s2229_s0, %s1369_s16  ;;  %s228_s27 = scalar_lea.vmem [#allocation4], %s1280_s10 }
  0x4a   : > { %s237_s11 = sshll.u32 %s228_s27, 4  ;;  %p2047_p2 = pnand %p1516_p3, %p52_p5  ;;  %s2051_s11 = int_to_ptr.vmem [resolvable:$true] %s237_s11 }
  0x4b   : > { %s2053_s13 = scalar_lea.sflag [#allocation5], %s224_s15  ;;  %s1732_s14 = scalar_lea.hbm %s2043_s9, 128 }
  0x4c   : > { %p1733_p11 = scmp.ne.s32.totalorder %s2043_s9, %s1732_s14  ;;  %p1734_p12 = pneg %p2047_p2 }
  0x4d   : > { %s1737_s24 = scalar_lea.hbm %s2229_s0, 256  ;;  %p1738_p4 = scmp.lt.u32.totalorder %s2043_s9, %s2229_s0 }
  0x4e   : > { %p1735_p0 = pnand %p1734_p12, %p1733_p11  ;;  %p1739_p13 = scmp.lt.u32.totalorder %s1737_s24, %s1732_s14 }
  0x4f   : > { %p1741_p10 = scmp.lt.u32.totalorder %s1732_s14, %s2043_s9 }
  0x50   : > { %p1736_p1 = pneg %p1735_p0  ;;  %p1740_p6 = por %p1739_p13, %p1738_p4 }
  0x52   : > { %p1742_p3 = por %p1741_p10, %p1740_p6 }
  0x54   : > { %p1743_p5 = pnand %p1742_p3, %p1736_p1 }
  0x56   : > { %1746 = shalt.err (!%p1743_p5)
}
  0x57   : > { %s1747_s15 = scalar_lea.vmem %s2051_s11, 128  ;;  %s1856_s10 = smov [#allocation4]  }
  0x58   : > { %p1748_p9 = scmp.ne.s32.totalorder %s2051_s11, %s1747_s15  ;;  %s1752_s16 = sshll.u32 %s1856_s10, 4  ;;  %s1753_s16 = int_to_ptr.vmem [resolvable:$false] %s1752_s16 }
  0x59   : > { %s1754_s7 = scalar_lea.vmem %s1753_s16, 256  ;;  %p1755_p7 = scmp.lt.s32.totalorder %s2051_s11, %s1753_s16 }
  0x5a   : > { %p1750_p11 = pnand %p1748_p9, %p1734_p12  ;;  %p1756_p4 = scmp.lt.s32.totalorder %s1754_s7, %s1747_s15 }
  0x5c   : > { %p1751_p0 = pneg %p1750_p11  ;;  %p1757_p13 = por %p1756_p4, %p1755_p7 }
  0x5e   : > { %p1758_p6 = pnand %p1757_p13, %p1751_p0 }
  0x60   : > { %1761 = shalt.err (!%p1758_p6)
}
  0x61   : > { %s2248_s14 = smov 64   ;;  %249 = sbr.rel (%p1947_p8) target bundleno = 740 (0x2e4), region = 40 }
  0x62   : > { %1509 = dma.hbm_to_vmem [thread:$0]  (!%p2047_p2), %s2043_s9, 128, %s2051_s11, %s2053_s13, %s2248_s14, %s2248_s14, %s1855_s6  }
  0x63   : > { %s2087_s24 = sand.u32 (!%p1947_p8), 1, %s1832_s19   ;;  %p2249_p7 = scmp.ne.s32.totalorder (!%p1947_p8), %s2242_s28, 0 }
  0x64   : > { %s1284_s27 = sshll.u32 (!%p1947_p8), %s2087_s24, 3  ;;  %s252_s15 = scalar_lea.sflag (!%p1947_p8), [#allocation5], %s2087_s24 }
  0x65   : > { %s255_s25 = scalar_lea.vmem (!%p1947_p8), [#allocation4], %s1284_s27 }
  0x68   : > { %1815 = dma.done.wait (%p2249_p7), %s252_s15, 128  }
  0x69   : > { %1817 = vsyncadd (%p2249_p7), %s252_s15, 4294967168  ;;  %p2250_p2 = scmp.ne.s32.totalorder %s2240_s26, 0 }
  0x6b   : > { %1819 = dma.done.wait (%p2250_p2), [#allocation8], 9216  }
  0x6c   : > { %1821 = vsyncadd (%p2250_p2), [#allocation8], 4294958080  ;;  %v1857_v0 = vmov 0   ;;  %v1858_v1 = vmov 0.0   ;;  %v1579_v2 = vld [vmem:[#allocation7 + $0x4] ss:$8 sps:$4 sm:$0xff]  }
  0x6d   : > { %297 = vst [vmem:[#allocation2] sm:$0xff] %v1857_v0  ;;  %298 = vst [vmem:[#allocation3] sm:$0xff] %v1857_v0  ;;  %457 = vmatprep.mubr.bf16.mxu0 %v1857_v0  ;;  %1405 = vmatprep.subr.bf16.mxu1 %v1858_v1  ;;  %v1581_v3 = vld [vmem:[#allocation7] ss:$8 sps:$4 sm:$0xff]   ;;  %v1582_v4 = vld [vmem:[#allocation7 + $0x14] ss:$8 sps:$4 sm:$0xff]  }
  0x6e   : > { %425 = vmatprep.subr.bf16.mxu0 %v1579_v2  ;;  %v1584_v5 = vld [vmem:[#allocation7 + $0x10] ss:$8 sps:$4 sm:$0xff]   ;;  %v1585_v6 = vld [vmem:[#allocation7 + $0x24] ss:$8 sps:$4 sm:$0xff]   ;;  %v1587_v7 = vld [vmem:[#allocation7 + $0x20] ss:$8 sps:$4 sm:$0xff]  }
  0x6f   : > { %426 = vmatpush1.bf16.msra.mxu0 %v1581_v3  ;;  %v1588_v8 = vld [vmem:[#allocation7 + $0x34] ss:$8 sps:$4 sm:$0xff]   ;;  %v1590_v9 = vld [vmem:[#allocation7 + $0x30] ss:$8 sps:$4 sm:$0xff]   ;;  %v1591_v10 = vld [vmem:[#allocation7 + $0x44] ss:$8 sps:$4 sm:$0xff]  }
  0x70   : > { %427 = vmatprep.subr.bf16.mxu0 %v1582_v4  ;;  %v2105_v11 = vld [vmem:[%s255_s25] sm:$0xff]   ;;  %v1593_v12 = vld [vmem:[#allocation7 + $0x40] ss:$8 sps:$4 sm:$0xff]   ;;  %v1597_v15 = vld [vmem:[#allocation7 + $0x64] ss:$8 sps:$4 sm:$0xff]   ;;  %vm340_vm0 = vcmask 1040384  }
  0x71   : > { %307 = vst [vmem:[#allocation2 + $0x8] sm:$0xff] %v2105_v11  ;;  %v1594_v13 = vld [vmem:[#allocation7 + $0x54] ss:$8 sps:$4 sm:$0xff]   ;;  %v1596_v14 = vld [vmem:[#allocation7 + $0x50] ss:$8 sps:$4 sm:$0xff]   ;;  %v1652_v28 = vld [vmem:[#allocation9] sm:$0xff]  }
  0x72   : > { %v1599_v16 = vld [vmem:[#allocation7 + $0x60] ss:$8 sps:$4 sm:$0xff]   ;;  %v1600_v17 = vld [vmem:[#allocation7 + $0x74] ss:$8 sps:$4 sm:$0xff]   ;;  %v1602_v20 = vld [vmem:[#allocation7 + $0x70] ss:$8 sps:$4 sm:$0xff]   ;;  %1406 = vmatpush3.bf16.msra.mxu1 %v1652_v28 }
  0x73   : > { %428 = vmatpush1.bf16.msra.mxu0 %v1584_v5  ;;  %v1605_v23 = vld [vmem:[#allocation7 + $0x84] ss:$8 sps:$4 sm:$0xff]   ;;  %v1603_v24 = vld [vmem:[#allocation7 + $0x80] ss:$8 sps:$4 sm:$0xff]   ;;  %v1609_v26 = vld [vmem:[#allocation7 + $0x94] ss:$8 sps:$4 sm:$0xff]   ;;  %1407 = vmatprep.subr.bf16.mxu1 %v1858_v1 }
  0x74   : > { %429 = vmatprep.subr.bf16.mxu0 %v1585_v6  ;;  %v320_v18 = vld [vmem:[#allocation2] sm:$0x80]  ;;  %v1607_v27 = vld [vmem:[#allocation7 + $0x90] ss:$8 sps:$4 sm:$0xff]   ;;  %v1612_v29 = vld [vmem:[#allocation7 + $0xa4] ss:$8 sps:$4 sm:$0xff]  }
  0x75   : > { %v341_v21 = vrot.slane %v320_v18, 7  ;;  %v1653_v30 = vld [vmem:[#allocation9 + $0x8] sm:$0xff]   ;;  %v1615_v32 = vld [vmem:[#allocation7 + $0xb4] ss:$8 sps:$4 sm:$0xff]   ;;  %v1613_v34 = vld [vmem:[#allocation7 + $0xb0] ss:$8 sps:$4 sm:$0xff]  }
  0x76   : > { %v1610_v31 = vld [vmem:[#allocation7 + $0xa0] ss:$8 sps:$4 sm:$0xff]   ;;  %v1654_v33 = vld [vmem:[#allocation9 + $0x10] sm:$0xff]   ;;  %1408 = vmatpush3.bf16.msra.mxu1 %v1653_v30  ;;  %v1618_v35 = vld [vmem:[#allocation7 + $0xc4] ss:$8 sps:$4 sm:$0xff]   ;;  %v495_v39 = vshrl.u32 %v2105_v11, 16 }
  0x77   : > { %430 = vmatpush1.bf16.msra.mxu0 %v1587_v7  ;;  %1409 = vmatprep.subr.bf16.mxu1 %v1858_v1  ;;  %v1616_v36 = vld [vmem:[#allocation7 + $0xc0] ss:$8 sps:$4 sm:$0xff]   ;;  %v1621_v37 = vld [vmem:[#allocation7 + $0xd4] ss:$8 sps:$4 sm:$0xff]   ;;  %v1619_v38 = vld [vmem:[#allocation7 + $0xd0] ss:$8 sps:$4 sm:$0xff]  }
  0x78   : > { %431 = vmatprep.subr.bf16.mxu0 %v1588_v8  ;;  %v321_v19 = vld [vmem:[#allocation2 + $0x8] sm:$0x7f]  ;;  %v1624_v40 = vld [vmem:[#allocation7 + $0xe4] ss:$8 sps:$4 sm:$0xff]   ;;  %v491_v41 = vshrl.u32 %v320_v18, 16  ;;  %v497_v43 = vrot.slane %v495_v39, 7  ;;  %v310_v8 = vlaneseq }
  0x79   : > { %v342_v22 = vrot.slane %v321_v19, 7  ;;  %v1622_v42 = vld [vmem:[#allocation7 + $0xe0] ss:$8 sps:$4 sm:$0xff]   ;;  %v498_v44 = vshll.u32 %v2105_v11, 16  ;;  %v1627_v45 = vld [vmem:[#allocation7 + $0xf4] ss:$8 sps:$4 sm:$0xff]  }
  0x7a   : > { %1410 = vmatpush3.bf16.msra.mxu1 %v1654_v33  ;;  %v1625_v46 = vld [vmem:[#allocation7 + $0xf0] ss:$8 sps:$4 sm:$0xff]   ;;  %v493_v47 = vrot.slane %v491_v41, 7  ;;  %v1630_v49 = vld [vmem:[#allocation7 + $0x104] ss:$8 sps:$4 sm:$0xff]   ;;  %vm1859_vm2 = vmmov 0  }
  0x7b   : > { %432 = vmatpush1.bf16.msra.mxu0 %v1590_v9  ;;  %v343_v25 = vsel %vm340_vm0, %v341_v21, %v342_v22  ;;  %1411 = vmatprep.subr.bf16.mxu1 %v1858_v1  ;;  %v500_v48 = vor.u32 %v498_v44, %v497_v43  ;;  %vm489_vm1 = vsmask.f32 256  ;;  %v1628_v50 = vld [vmem:[#allocation7 + $0x100] ss:$8 sps:$4 sm:$0xff]   ;;  %v1633_v52 = vld [vmem:[#allocation7 + $0x114] ss:$8 sps:$4 sm:$0xff]  }
  0x7c   : > { %433 = vmatprep.subr.bf16.mxu0 %v1591_v10  ;;  %v1631_v53 = vld [vmem:[#allocation7 + $0x110] ss:$8 sps:$4 sm:$0xff]   ;;  %v1636_v54 = vld [vmem:[#allocation7 + $0x124] ss:$8 sps:$4 sm:$0xff]   ;;  %v1634_v55 = vld [vmem:[#allocation7 + $0x120] ss:$8 sps:$4 sm:$0xff]   ;;  %1421 = vmatprep.mubr.msk.bf16.mxu1 %vm1859_vm2, %v1858_v1 }
  0x7d   : > { %v501_v51 = vsel %vm489_vm1, %v493_v47, %v500_v48  ;;  %v1639_v56 = vld [vmem:[#allocation7 + $0x134] ss:$8 sps:$4 sm:$0xff]   ;;  %v1637_v57 = vld [vmem:[#allocation7 + $0x130] ss:$8 sps:$4 sm:$0xff]   ;;  %v1642_v58 = vld [vmem:[#allocation7 + $0x144] ss:$8 sps:$4 sm:$0xff]  }
  0x7e   : > { %v1640_v59 = vld [vmem:[#allocation7 + $0x140] ss:$8 sps:$4 sm:$0xff]   ;;  %v1645_v60 = vld [vmem:[#allocation7 + $0x154] ss:$8 sps:$4 sm:$0xff]   ;;  %v1643_v61 = vld [vmem:[#allocation7 + $0x150] ss:$8 sps:$4 sm:$0xff]  }
  0x7f   : > { %434 = vmatpush1.bf16.msra.mxu0 %v1593_v12  ;;  %v1648_v62 = vld [vmem:[#allocation7 + $0x164] ss:$8 sps:$4 sm:$0xff]   ;;  %v1646_v63 = vld [vmem:[#allocation7 + $0x160] ss:$8 sps:$4 sm:$0xff]   ;;  %v1649_v2 = vld [vmem:[#allocation7 + $0x170] ss:$8 sps:$4 sm:$0xff]  }
  0x80   : > { %435 = vmatprep.subr.bf16.mxu0 %v1594_v13  ;;  %v1655_v3 = vld [vmem:[#allocation9 + $0x18] sm:$0xff]   ;;  %v1656_v4 = vld [vmem:[#allocation9 + $0x20] sm:$0xff]   ;;  %v1657_v5 = vld [vmem:[#allocation9 + $0x28] sm:$0xff]   ;;  %v2125_v9 = vshrl.u32 %v310_v8, 7  ;;  %s1372_s9 = sshll.u32 %s1840_s21, 7  ;;  %s289_s11 = scalar_lea.vmem [#allocation10], %s1284_s27 }
  0x81   : > { %1412 = vmatpush3.bf16.msra.mxu1 %v1655_v3  ;;  %v1658_v6 = vld [vmem:[#allocation9 + $0x30] sm:$0xff]   ;;  %v1659_v7 = vld [vmem:[#allocation9 + $0x38] sm:$0xff]   ;;  %v784_v22 = vld [vmem:[#allocation3] sm:$0x80]  ;;  %s1168_s13 = sshll.u32 %s289_s11, 4  ;;  %s2178_s7 = scalar_lea.hbm %s2234_s5, %s1372_s9  ;;  %s2180_s13 = int_to_ptr.vmem [resolvable:$true] %s1168_s13 }
  0x82   : > { %1413 = vmatprep.subr.bf16.mxu1 %v1858_v1  ;;  %v312_v10 = vsub.s32 0, %v2125_v9  ;;  %v1661_v28 = vld [vmem:[#allocation9 + $0x48] sm:$0xff]   ;;  %v1663_v30 = vld [vmem:[#allocation9 + $0x58] sm:$0xff]   ;;  %v1668_v41 = vld [vmem:[#allocation9 + $0x80] sm:$0xff]   ;;  %s1153_s14 = scalar_lea.sflag [#allocation6], %s2087_s24  ;;  %s1762_s15 = scalar_lea.vmem %s2180_s13, 128 }
  0x83   : > { %436 = vmatpush1.bf16.msra.mxu0 %v1596_v14  ;;  %v1669_v43 = vld [vmem:[#allocation9 + $0x88] sm:$0xff]   ;;  %v1670_v44 = vld [vmem:[#allocation9 + $0x90] sm:$0xff]   ;;  %p1763_p8 = scmp.ne.s32.totalorder %s2180_s13, %s1762_s15  ;;  %p2251_p12 = scmp.ne.s32.totalorder %s2246_s8, 0 }
  0x84   : > { %437 = vmatprep.subr.bf16.mxu0 %v1597_v15  ;;  %v1673_v47 = vld [vmem:[#allocation9 + $0xa8] sm:$0xff]   ;;  %v1674_v48 = vld [vmem:[#allocation9 + $0xb0] sm:$0xff]   ;;  %s1860_s21 = smov [#allocation10]  }
  0x85   : > { %1414 = vmatpush3.bf16.msra.mxu1 %v1656_v4  ;;  %p1764_p1 = pnand %p1763_p8, %p2251_p12  ;;  %s1766_s27 = sshll.u32 %s1860_s21, 4  ;;  %s1767_s27 = int_to_ptr.vmem [resolvable:$false] %s1766_s27 }
  0x86   : > { %1415 = vmatprep.subr.bf16.mxu1 %v1858_v1  ;;  %s1768_s25 = scalar_lea.vmem %s1767_s27, 256  ;;  %p1769_p3 = scmp.lt.s32.totalorder %s2180_s13, %s1767_s27 }
  0x87   : > { %438 = vmatpush1.bf16.msra.mxu0 %v1599_v16  ;;  %p1765_p10 = pneg %p1764_p1  ;;  %p1770_p5 = scmp.lt.s32.totalorder %s1768_s25, %s1762_s15 }
  0x88   : > { %439 = vmatprep.subr.bf16.mxu0 %v1600_v17 }
  0x89   : > { %1416 = vmatpush3.bf16.msra.mxu1 %v1657_v5  ;;  %p1771_p9 = por %p1770_p5, %p1769_p3 }
  0x8a   : > { %1417 = vmatprep.subr.bf16.mxu1 %v1858_v1 }
  0x8b   : > { %440 = vmatpush1.bf16.msra.mxu0 %v1602_v20  ;;  %p1772_p11 = pnand %p1771_p9, %p1765_p10 }
  0x8c   : > { %583 = vmatprep.subr.bf16.mxu0 %v1605_v23  ;;  %v804_v23 = vrot.slane %v784_v22, 7 }
  0x8d   : > { %1418 = vmatpush3.bf16.msra.mxu1 %v1658_v6 }
  0x8e   : > { %458 = vmatmul.mubr.bf16.vlgmr.msra.gmra.mrb[0].mxu0 %v343_v25  ;;  %1419 = vmatprep.subr.bf16.mxu1 %v1858_v1 }
  0x8f   : > { %584 = vmatpush1.bf16.msra.mxu0 %v1603_v24  ;;  %615 = vmatprep.mubr.bf16.mxu0 %v1857_v0 }
  0x90   : > { %585 = vmatprep.subr.bf16.mxu0 %v1609_v26  ;;  %v1660_v26 = vld [vmem:[#allocation9 + $0x40] sm:$0xff]  }
  0x91   : > { %1420 = vmatpush3.bf16.msra.mxu1 %v1659_v7 }
  0x92   : > { %1425 = vmatprep.subr.bf16.mxu1 %v1858_v1 }
  0x93   : > { %586 = vmatpush1.bf16.msra.mxu0 %v1607_v27 }
  0x94   : > { %587 = vmatprep.subr.bf16.mxu0 %v1612_v29  ;;  %v1662_v29 = vld [vmem:[#allocation9 + $0x50] sm:$0xff]  }
  0x97   : > { %588 = vmatpush1.bf16.msra.mxu0 %v1610_v31  ;;  %v1664_v31 = vld [vmem:[#allocation9 + $0x60] sm:$0xff]  }
  0x98   : > { %589 = vmatprep.subr.bf16.mxu0 %v1615_v32  ;;  %v1665_v32 = vld [vmem:[#allocation9 + $0x68] sm:$0xff]  }
  0x9b   : > { %590 = vmatpush1.bf16.msra.mxu0 %v1613_v34  ;;  %v1666_v34 = vld [vmem:[#allocation9 + $0x70] sm:$0xff]  }
  0x9c   : > { %591 = vmatprep.subr.bf16.mxu0 %v1618_v35  ;;  %v917_v35 = vshrl.u32 %v784_v22, 16 }
  0x9e   : > { %v919_v39 = vrot.slane %v917_v35, 7 }
  0x9f   : > { %592 = vmatpush1.bf16.msra.mxu0 %v1616_v36 }
  0xa0   : > { %593 = vmatprep.subr.bf16.mxu0 %v1621_v37  ;;  %v1667_v37 = vld [vmem:[#allocation9 + $0x78] sm:$0xff]  }
  0xa3   : > { %594 = vmatpush1.bf16.msra.mxu0 %v1619_v38 }
  0xa4   : > { %595 = vmatprep.subr.bf16.mxu0 %v1624_v40 }
  0xa7   : > { %596 = vmatpush1.bf16.msra.mxu0 %v1622_v42 }
  0xa8   : > { %597 = vmatprep.subr.bf16.mxu0 %v1627_v45  ;;  %v1671_v45 = vld [vmem:[#allocation9 + $0x98] sm:$0xff]  }
  0xab   : > { %598 = vmatpush1.bf16.msra.mxu0 %v1625_v46  ;;  %v1672_v46 = vld [vmem:[#allocation9 + $0xa0] sm:$0xff]  }
  0xac   : > { %726 = vmatprep.subr.bf16.mxu0 %v1630_v49  ;;  %v1675_v49 = vld [vmem:[#allocation9 + $0xb8] sm:$0xff]  }
  0xae   : > { %616 = vmatmul.mubr.bf16.vlgmr.msra.gmra.mrb[0].mxu0 %v501_v51  ;;  %v1337_v51 = vld [vmem:[%s2233_s4] ss:$0 sm:$0xff] }
  0xaf   : > { %727 = vmatpush1.bf16.msra.mxu0 %v1628_v50  ;;  %758 = vmatprep.mubr.bf16.mxu0 %v1857_v0  ;;  %v1651_v0 = vld [vmem:[#allocation7 + $0x174] ss:$8 sps:$4 sm:$0xff]   ;;  %v316_v50 = vsub.s32 1, %v2125_v9 }
  0xb0   : > { %728 = vmatprep.subr.bf16.mxu0 %v1633_v52 }
  0xb3   : > { %729 = vmatpush1.bf16.msra.mxu0 %v1631_v53 }
  0xb4   : > { %730 = vmatprep.subr.bf16.mxu0 %v1636_v54 }
  0xb7   : > { %731 = vmatpush1.bf16.msra.mxu0 %v1634_v55 }
  0xb8   : > { %732 = vmatprep.subr.bf16.mxu0 %v1639_v56 }
  0xbb   : > { %733 = vmatpush1.bf16.msra.mxu0 %v1637_v57 }
  0xbc   : > { %734 = vmatprep.subr.bf16.mxu0 %v1642_v58 }
  0xbf   : > { %735 = vmatpush1.bf16.msra.mxu0 %v1640_v59 }
  0xc0   : > { %736 = vmatprep.subr.bf16.mxu0 %v1645_v60 }
  0xc3   : > { %737 = vmatpush1.bf16.msra.mxu0 %v1643_v61 }
  0xc4   : > { %738 = vmatprep.subr.bf16.mxu0 %v1648_v62 }
  0xc7   : > { %739 = vmatpush1.bf16.msra.mxu0 %v1646_v63 }
  0xc8   : > { %740 = vmatprep.subr.bf16.mxu0 %v1651_v0 }
  0xcb   : > { %741 = vmatpush1.bf16.msra.mxu0 %v1649_v2 }
  0xce   : > { %759 = vmatmul.mubr.bf16.vlgmr.msra.gmra.mrb[0].mxu0 %v2105_v11  ;;  %v2131_v11 = vld [vmem:[%s2231_s2] sm:$0x3] }
  0xcf   : > { %v313_v12 = vrot.slane %v2131_v11, %v312_v10  ;;  %v317_v52 = vrot.slane %v2131_v11, %v316_v50 }
 0x1a1   : > { %v760_v13 = vpop.f32.mrb[0].mxu0 }
 0x1a2   : > { %v1465_v14 = vadd.f32 %v760_v13, %v313_v12  ;;  %v2134_v15 = vpop.f32.mrb[1].mxu0 }
 0x1a3   : > { %v764_v16 = vpop.f32.mrb[2].mxu0  ;;  %v1466_v57 = vadd.f32 %v2134_v15, %v317_v52 }
 0x1a4   : > { %v1467_v17 = vadd.f32 %v764_v16, %v313_v12  ;;  %v2136_v18 = vpop.f32.mrb[3].mxu0  ;;  %v773_v19 = vmax.f32 %v1465_v14, 0.0 }
 0x1a5   : > { %v1468_v60 = vadd.f32 %v2136_v18, %v317_v52 }
 0x1a6   : > { %v774_v20 = vmax.f32 %v1467_v17, 0.0 }
 0x1a8   : > { %v2138_v21 = vpack.c.bf16 %v774_v20, %v773_v19 }
 0x1aa   : > { %776 = vst [vmem:[#allocation3 + $0x8] sm:$0xff] %v2138_v21  ;;  %v921_v33 = vshrl.u32 %v2138_v21, 16  ;;  %v924_v38 = vshll.u32 %v2138_v21, 16 }
 0x1ac   : > { %v923_v36 = vrot.slane %v921_v33, 7 }
 0x1ae   : > { %v926_v40 = vor.u32 %v924_v38, %v923_v36 }
 0x1b0   : > { %v927_v42 = vsel %vm489_vm1, %v919_v39, %v926_v40 }
 0x1b1   : > { %v785_v24 = vld [vmem:[#allocation3 + $0x8] sm:$0x7f] }
 0x1b2   : > { %v805_v25 = vrot.slane %v785_v24, 7 }
 0x1b4   : > { %v806_v27 = vsel %vm340_vm0, %v804_v23, %v805_v25 }
 0x1b5   : > { %1422 = vmatmul.mubr.bf16.vlgmr.msra.gmra.mrb[0].mxu1 %v806_v27 }
 0x1b6   : > { %1426 = vmatpush3.bf16.msra.mxu1 %v1660_v26  ;;  %1441 = vmatprep.mubr.msk.bf16.mxu1 %vm1859_vm2, %v1858_v1 }
 0x1b7   : > { %1427 = vmatprep.subr.bf16.mxu1 %v1858_v1 }
 0x1ba   : > { %1428 = vmatpush3.bf16.msra.mxu1 %v1661_v28 }
 0x1bb   : > { %1429 = vmatprep.subr.bf16.mxu1 %v1858_v1 }
 0x1be   : > { %1430 = vmatpush3.bf16.msra.mxu1 %v1662_v29 }
 0x1bf   : > { %1431 = vmatprep.subr.bf16.mxu1 %v1858_v1 }
 0x1c2   : > { %1432 = vmatpush3.bf16.msra.mxu1 %v1663_v30 }
 0x1c3   : > { %1433 = vmatprep.subr.bf16.mxu1 %v1858_v1 }
 0x1c6   : > { %1434 = vmatpush3.bf16.msra.mxu1 %v1664_v31 }
 0x1c7   : > { %1435 = vmatprep.subr.bf16.mxu1 %v1858_v1 }
 0x1ca   : > { %1436 = vmatpush3.bf16.msra.mxu1 %v1665_v32 }
 0x1cb   : > { %1437 = vmatprep.subr.bf16.mxu1 %v1858_v1 }
 0x1ce   : > { %1438 = vmatpush3.bf16.msra.mxu1 %v1666_v34 }
 0x1cf   : > { %1439 = vmatprep.subr.bf16.mxu1 %v1858_v1 }
 0x1d2   : > { %1440 = vmatpush3.bf16.msra.mxu1 %v1667_v37 }
 0x1d3   : > { %1445 = vmatprep.subr.bf16.mxu1 %v1858_v1 }
 0x1d5   : > { %1442 = vmatmul.mubr.bf16.vlgmr.msra.gmra.mrb[0].mxu1 %v927_v42 }
 0x1d6   : > { %1446 = vmatpush3.bf16.msra.mxu1 %v1668_v41  ;;  %1461 = vmatprep.mubr.msk.bf16.mxu1 %vm1859_vm2, %v1858_v1 }
 0x1d7   : > { %1447 = vmatprep.subr.bf16.mxu1 %v1858_v1 }
 0x1da   : > { %1448 = vmatpush3.bf16.msra.mxu1 %v1669_v43 }
 0x1db   : > { %1449 = vmatprep.subr.bf16.mxu1 %v1858_v1 }
 0x1de   : > { %1450 = vmatpush3.bf16.msra.mxu1 %v1670_v44 }
 0x1df   : > { %1451 = vmatprep.subr.bf16.mxu1 %v1858_v1 }
 0x1e2   : > { %1452 = vmatpush3.bf16.msra.mxu1 %v1671_v45 }
 0x1e3   : > { %1453 = vmatprep.subr.bf16.mxu1 %v1858_v1 }
 0x1e6   : > { %1454 = vmatpush3.bf16.msra.mxu1 %v1672_v46 }
 0x1e7   : > { %1455 = vmatprep.subr.bf16.mxu1 %v1858_v1 }
 0x1ea   : > { %1456 = vmatpush3.bf16.msra.mxu1 %v1673_v47 }
 0x1eb   : > { %1457 = vmatprep.subr.bf16.mxu1 %v1858_v1 }
 0x1ee   : > { %1458 = vmatpush3.bf16.msra.mxu1 %v1674_v48 }
 0x1ef   : > { %1459 = vmatprep.subr.bf16.mxu1 %v1858_v1 }
 0x1f2   : > { %1460 = vmatpush3.bf16.msra.mxu1 %v1675_v49 }
 0x1f5   : > { %1462 = vmatmul.mubr.bf16.vlgmr.msra.gmra.mrb[0].mxu1 %v2138_v21 }
 0x2c8   : > { %v1118_v53 = vpop.f32.mrb[0].mxu1 }
 0x2c9   : > { %v1469_v54 = vadd.f32 %v1337_v51, %v1118_v53  ;;  %v1463_v55 = vpop.f32.mrb[1].mxu1 }
 0x2ca   : > { %v1121_v56 = vpop.f32.mrb[2].mxu1 }
 0x2cb   : > { %v1127_v1 = vmax.f32 %v1469_v54, 0.0  ;;  %v1470_v58 = vadd.f32 %v1337_v51, %v1121_v56  ;;  %v1464_v59 = vpop.f32.mrb[3].mxu1 }
 0x2cd   : > { %v1129_v61 = vadd.f32 %v1466_v57, %v1127_v1  ;;  %v1128_v62 = vmax.f32 %v1470_v58, 0.0 }
 0x2cf   : > { %v1130_v63 = vadd.f32 %v1468_v60, %v1128_v62  ;;  %v1131_v0 = vmax.f32 %v1129_v61, 0.0 }
 0x2d1   : > { %v1132_v2 = vmax.f32 %v1130_v63, 0.0 }
 0x2d3   : > { %v1376_v3 = vpack.c.bf16 %v1132_v2, %v1131_v0 }
 0x2d5   : > { %1377 = vst [vmem:[%s289_s11] sm:$0xff] %v1376_v3  }
 0x2d6   : > { %1775 = shalt.err (!%p1772_p11)
}
 0x2d7   : > { %s1776_s26 = scalar_lea.hbm %s2178_s7, 128  ;;  %s1780_s6 = scalar_lea.hbm %s2234_s5, 256 }
 0x2d8   : > { %p1777_p0 = scmp.ne.s32.totalorder %s2178_s7, %s1776_s26  ;;  %p1781_p6 = scmp.lt.u32.totalorder %s2178_s7, %s2234_s5 }
 0x2d9   : > { %p1782_p7 = scmp.lt.u32.totalorder %s1780_s6, %s1776_s26  ;;  %p1784_p8 = scmp.lt.u32.totalorder %s1776_s26, %s2178_s7 }
 0x2da   : > { %p1778_p4 = pnand %p1777_p0, %p2251_p12 }
 0x2db   : > { %p1783_p2 = por %p1782_p7, %p1781_p6 }
 0x2dc   : > { %p1779_p13 = pneg %p1778_p4 }
 0x2dd   : > { %p1785_p1 = por %p1784_p8, %p1783_p2 }
 0x2df   : > { %p1786_p10 = pnand %p1785_p1, %p1779_p13 }
 0x2e1   : > { %1789 = shalt.err (!%p1786_p10)
}
 0x2e2   : > { %s1861_s10 = smov 64   ;;  %s1862_s16 = smov 4  }
 0x2e3   : > { %1497 = dma.vmem_to_hbm [thread:$0]  (%p2251_p12), %s2180_s13, 128, %s2178_s7, %s1153_s14, %s1861_s10, %s1861_s10, %s1862_s16  }
 0x2e4 PF: > { %s1183_s15 = sand.u32 1, %s1828_s18   ;;  %p2252_p3 = scmp.ne.s32.totalorder %s2243_s29, 0 }
 0x2e5   : > { %p2253_p5 = scmp.ge.s32.totalorder %s1848_s23, 2  ;;  %s1184_s21 = scalar_lea.sflag [#allocation6], %s1183_s15 }
 0x2e7   : > { %p1511_p9 = pnand %p2253_p5, %p2252_p3 }
 0x2e9   : > { %1823 = dma.done.wait (!%p1511_p9), %s1184_s21, 128  }
 0x2ea   : > { %1825 = vsyncadd (!%p1511_p9), %s1184_s21, 4294967168  ;;  %s22_s23 = sadd.s32 1, %s1848_s23   ;;  %s2254_s18 = smov %s1832_s19 }
 0x2eb   : > { %p19_p11 = scmp.ge.s32.totalorder %s22_s23, 4   ;;  %s2255_s19 = smov %s1836_s20 }
 0x2ec   : > { %s2256_s20 = smov %s2038_s17  ;;  %s2257_s21 = smov %s1844_s22 }
 0x2ed   : > { %s2258_s22 = smov %s2260_s12  ;;  %21 = sbr.rel (!%p19_p11) target bundleno = 7 (0x7), region = 101 }
 0x2f4   :  { %1189 = vsyncpa [#allocation5], 1 }
 0x2f5   :  { %1191 = vsyncpa [#allocation5 + $0x1], 1 }
 0x2f6   :  { %1192 = vsyncpa [#allocation8], 1 }
 0x2f7   :  { %1193 = vsyncpa [#allocation6], 1 }
 0x2f8   :  { %1195 = vsyncpa [#allocation6 + $0x1], 1 }

</bundles_post_ra>
